<compile_context>
chip_gen: v5e
topology: v5e:2x2
jax: 0.10.0
libtpu: 0.0.40
codegen_flags: <defaults>
</compile_context>

<pallas_src>
import functools
import numpy as np

import jax
import jax.numpy as jnp
from jax.experimental import pallas as pl
from jax.experimental.pallas import tpu as pltpu


_VMEM_LIMIT = 48 * 1024 * 1024      # <= v7x's 64 MiB physical, > v5e's default


def _round_up(x, m):
    return (x + m - 1) // m * m


def _cparams(n_axes):
    return pltpu.CompilerParams(
        dimension_semantics=("parallel",) * n_axes,
        vmem_limit_bytes=_VMEM_LIMIT)


# --------------------------------------------------------------------------
# Pallas kernel 1: full-K matmul with fused BatchNorm affine + optional ReLU.
# Used for 1x1 convs and the (small) stride-2 im2col convs.
# --------------------------------------------------------------------------
def _mm_affine_kernel(a_ref, b_ref, s_ref, c_ref, o_ref, *, relu):
    y = jnp.dot(a_ref[...], b_ref[...], preferred_element_type=jnp.float32)
    y = y * s_ref[...] + c_ref[...]
    if relu:
        y = jnp.maximum(y, 0.0)
    o_ref[...] = y.astype(o_ref.dtype)


def pallas_matmul_affine(a, b, scale, bias, relu, out_dtype=jnp.bfloat16):
    """relu?((a @ b) * scale + bias); bf16 operands, f32 accumulation."""
    M, K = a.shape
    K2, N = b.shape
    assert K == K2
    itemsize = jnp.dtype(a.dtype).itemsize
    m8 = max(_round_up(M, 8), 8)
    tm = 1024
    while tm > 8 and (tm * K * itemsize > 4 * 1024 * 1024 or tm > m8):
        tm //= 2
    Mp = _round_up(M, tm)
    if Mp != M:
        a = jnp.pad(a, ((0, Mp - M), (0, 0)))
    s = scale.astype(jnp.float32).reshape(1, N)
    c = bias.astype(jnp.float32).reshape(1, N)
    out = pl.pallas_call(
        functools.partial(_mm_affine_kernel, relu=relu),
        out_shape=jax.ShapeDtypeStruct((Mp, N), out_dtype),
        grid=(Mp // tm,),
        in_specs=[
            pl.BlockSpec((tm, K), lambda i: (i, 0)),
            pl.BlockSpec((K, N), lambda i: (0, 0)),
            pl.BlockSpec((1, N), lambda i: (0, 0)),
            pl.BlockSpec((1, N), lambda i: (0, 0)),
        ],
        out_specs=pl.BlockSpec((tm, N), lambda i: (i, 0)),
        compiler_params=_cparams(1),
    )(a, b, s, c)
    return out[:M] if Mp != M else out


# --------------------------------------------------------------------------
# Pallas kernel 2: fused 3x3 stride-1 2-D conv (tap accumulation in VMEM),
# with BN affine + optional ReLU + optional residual in the epilogue.
# The padded activation of one batch element stays resident in VMEM.
# --------------------------------------------------------------------------
def _conv2d_tap_kernel(x_ref, w_ref, s_ref, c_ref, *rest, dil, relu, has_res):
    if has_res:
        res_ref, o_ref = rest
    else:
        (o_ref,) = rest
    _, th, w_out, cout = o_ref.shape
    cin = x_ref.shape[-1]
    h0 = pl.program_id(1) * th
    acc = jnp.zeros((th * w_out, cout), jnp.float32)
    for kh in range(3):
        row = x_ref[0, pl.ds(h0 + kh * dil, th)]          # (th, Wp, Cin)
        for kw in range(3):
            xt = row[:, kw * dil:kw * dil + w_out, :]     # (th, W, Cin)
            acc = acc + jnp.dot(xt.reshape(th * w_out, cin),
                                w_ref[kh * 3 + kw],
                                preferred_element_type=jnp.float32)
    y = acc * s_ref[...] + c_ref[...]
    if relu:
        y = jnp.maximum(y, 0.0)
    if has_res:
        y = y + res_ref[...].astype(jnp.float32).reshape(th * w_out, cout)
    o_ref[...] = y.reshape(1, th, w_out, cout).astype(o_ref.dtype)


def _pick_th(h, w, target=4096):
    best = 1
    for th in range(1, h + 1):
        if h % th:
            continue
        if th * w > target:
            continue
        if h >= 16 and th > h // 2:        # keep >= 2 grid steps along H
            continue
        best = th
    return best


def _fused_conv2d(x, w_taps, scale, bias, *, relu, dilation, residual):
    """x: (B,H,W,Cin) bf16, w_taps: (9, Cin, Cout).  stride 1, pad=dilation."""
    B, H, W, C = x.shape
    cout = w_taps.shape[-1]
    pad = dilation
    xp = jnp.pad(x, ((0, 0), (pad, pad), (pad, pad), (0, 0)))
    Hp, Wp = H + 2 * pad, W + 2 * pad
    th = _pick_th(H, W)
    s = scale.astype(jnp.float32).reshape(1, cout)
    c = bias.astype(jnp.float32).reshape(1, cout)
    in_specs = [
        pl.BlockSpec((1, Hp, Wp, C), lambda b, i: (b, 0, 0, 0)),
        pl.BlockSpec((9, C, cout), lambda b, i: (0, 0, 0)),
        pl.BlockSpec((1, cout), lambda b, i: (0, 0)),
        pl.BlockSpec((1, cout), lambda b, i: (0, 0)),
    ]
    args = [xp, w_taps, s, c]
    has_res = residual is not None
    if has_res:
        in_specs.append(pl.BlockSpec((1, th, W, cout),
                                     lambda b, i: (b, i, 0, 0)))
        args.append(residual)
    return pl.pallas_call(
        functools.partial(_conv2d_tap_kernel, dil=dilation, relu=relu,
                          has_res=has_res),
        out_shape=jax.ShapeDtypeStruct((B, H, W, cout), jnp.bfloat16),
        grid=(B, H // th),
        in_specs=in_specs,
        out_specs=pl.BlockSpec((1, th, W, cout), lambda b, i: (b, i, 0, 0)),
        compiler_params=_cparams(2),
    )(*args)


# --------------------------------------------------------------------------
# Pallas kernel 3: fused 3x3x3 stride-1 3-D conv (also used for the merged
# ConvTranspose3d with an 8-phase block-sparse weight).
# --------------------------------------------------------------------------
def _conv3d_tap_kernel(x_ref, w_ref, s_ref, c_ref, *rest, relu, has_res):
    if has_res:
        res_ref, o_ref = rest
    else:
        (o_ref,) = rest
    _, h_out, w_out, cout = o_ref.shape
    cin = x_ref.shape[-1]
    d = pl.program_id(1)
    acc = jnp.zeros((h_out * w_out, cout), jnp.float32)
    for kd in range(3):
        for kh in range(3):
            row = x_ref[d + kd, pl.ds(kh, h_out)]          # (H, Wp, Cin)
            for kw in range(3):
                xt = row[:, kw:kw + w_out, :]              # (H, W, Cin)
                acc = acc + jnp.dot(xt.reshape(h_out * w_out, cin),
                                    w_ref[(kd * 3 + kh) * 3 + kw],
                                    preferred_element_type=jnp.float32)
    y = acc * s_ref[...] + c_ref[...]
    if relu:
        y = jnp.maximum(y, 0.0)
    if has_res:
        y = y + res_ref[...].astype(jnp.float32).reshape(h_out * w_out, cout)
    o_ref[...] = y.reshape(1, h_out, w_out, cout).astype(o_ref.dtype)


def _fused_conv3d(x, w_taps, scale, bias, *, relu, residual):
    """x: (B,D,H,W,Cin) bf16, w_taps: (27, Cin, Cout).  stride 1, pad 1."""
    B, D, H, W, C = x.shape
    cout = w_taps.shape[-1]
    xp = jnp.pad(x, ((0, 0), (1, 1), (1, 1), (1, 1), (0, 0)))
    Dp, Hp, Wp = D + 2, H + 2, W + 2
    xp = xp.reshape(B * Dp, Hp, Wp, C)
    s = scale.astype(jnp.float32).reshape(1, cout)
    c = bias.astype(jnp.float32).reshape(1, cout)
    in_specs = [
        pl.BlockSpec((Dp, Hp, Wp, C), lambda b, d: (b, 0, 0, 0)),
        pl.BlockSpec((27, C, cout), lambda b, d: (0, 0, 0)),
        pl.BlockSpec((1, cout), lambda b, d: (0, 0)),
        pl.BlockSpec((1, cout), lambda b, d: (0, 0)),
    ]
    args = [xp, w_taps, s, c]
    has_res = residual is not None
    if has_res:
        rr = residual.reshape(B * D, H, W, cout)
        in_specs.append(pl.BlockSpec((1, H, W, cout),
                                     lambda b, d: (b * D + d, 0, 0, 0)))
        args.append(rr)
    out = pl.pallas_call(
        functools.partial(_conv3d_tap_kernel, relu=relu, has_res=has_res),
        out_shape=jax.ShapeDtypeStruct((B * D, H, W, cout), jnp.bfloat16),
        grid=(B, D),
        in_specs=in_specs,
        out_specs=pl.BlockSpec((1, H, W, cout),
                               lambda b, d: (b * D + d, 0, 0, 0)),
        compiler_params=_cparams(2),
    )(*args)
    return out.reshape(B, D, H, W, cout)


# --------------------------------------------------------------------------
# Pallas kernel 4: softmax over disparity + disparity regression.
# --------------------------------------------------------------------------
def _softmax_disp_kernel(x_ref, o_ref):
    x = x_ref[0]                                     # (Dp, T) f32
    m = jnp.max(x, axis=0, keepdims=True)
    e = jnp.exp(x - m)
    s = jnp.sum(e, axis=0, keepdims=True)
    d = jax.lax.broadcasted_iota(jnp.float32, x.shape, 0)
    o_ref[...] = (jnp.sum(e * d, axis=0, keepdims=True) / s)[None]


@jax.jit
def disparity_regression(x):
    """x: (B, D, H, W) f32 logits.  softmax over D, sum_d p*d -> (B, H, W)."""
    B, D, H, W = x.shape
    L = H * W
    xr = x.reshape(B, D, L)
    Dp = _round_up(D, 8)
    if Dp != D:
        xr = jnp.pad(xr, ((0, 0), (0, Dp - D), (0, 0)), constant_values=-1e30)
    T = min(32768, _round_up(L, 128))
    Lp = _round_up(L, T)
    if Lp != L:
        xr = jnp.pad(xr, ((0, 0), (0, 0), (0, Lp - L)))
    out = pl.pallas_call(
        _softmax_disp_kernel,
        out_shape=jax.ShapeDtypeStruct((B, 1, Lp), jnp.float32),
        grid=(B, Lp // T),
        in_specs=[pl.BlockSpec((1, Dp, T), lambda b, t: (b, 0, t))],
        out_specs=pl.BlockSpec((1, 1, T), lambda b, t: (b, 0, t)),
        compiler_params=_cparams(2),
    )(xr)
    return out[:, 0, :L].reshape(B, H, W)


# --------------------------------------------------------------------------
# im2col glue (only used for the small stride-2 convs) -- no zero K padding.
# --------------------------------------------------------------------------
def _extract_patches2d(x, k, stride, padding, dilation):
    B, H, W, C = x.shape
    if padding:
        x = jnp.pad(x, ((0, 0), (padding, padding), (padding, padding), (0, 0)))
    Hp, Wp = x.shape[1], x.shape[2]
    OH = (Hp - dilation * (k - 1) - 1) // stride + 1
    OW = (Wp - dilation * (k - 1) - 1) // stride + 1
    cols = []
    for kh in range(k):
        for kw in range(k):
            hs, ws = kh * dilation, kw * dilation
            cols.append(x[:, hs:hs + (OH - 1) * stride + 1:stride,
                          ws:ws + (OW - 1) * stride + 1:stride, :])
    return jnp.concatenate(cols, axis=-1), OH, OW, k * k * C


def _extract_patches3d(x, k, stride, padding):
    B, D, H, W, C = x.shape
    if padding:
        x = jnp.pad(x, ((0, 0), (padding, padding), (padding, padding),
                        (padding, padding), (0, 0)))
    Dp, Hp, Wp = x.shape[1], x.shape[2], x.shape[3]
    OD = (Dp - k) // stride + 1
    OH = (Hp - k) // stride + 1
    OW = (Wp - k) // stride + 1
    cols = []
    for kd in range(k):
        for kh in range(k):
            for kw in range(k):
                cols.append(x[:, kd:kd + (OD - 1) * stride + 1:stride,
                              kh:kh + (OH - 1) * stride + 1:stride,
                              kw:kw + (OW - 1) * stride + 1:stride, :])
    return jnp.concatenate(cols, axis=-1), OD, OH, OW, k * k * k * C


# --------------------------------------------------------------------------
# Conv wrappers (eval-mode BN folded into affine scale/bias).
# --------------------------------------------------------------------------
@functools.partial(jax.jit,
                   static_argnames=("stride", "padding", "dilation", "relu"))
def conv2d_bn(x, p, *, stride=1, padding=1, dilation=1, relu=True,
              residual=None):
    """x: (B,H,W,Cin); p['w']: (Cout,Cin,k,k) PyTorch layout."""
    w = p["w"]
    cout, cin, k = w.shape[0], w.shape[1], w.shape[2]
    xb = x.astype(jnp.bfloat16)
    if k == 1:
        assert residual is None
        if stride > 1:
            xb = xb[:, ::stride, ::stride, :]
        B, H, W, C = xb.shape
        a = xb.reshape(B * H * W, C)
        wm = w.reshape(cout, cin).T.astype(jnp.bfloat16)
        y = pallas_matmul_affine(a, wm, p["scale"], p["bias"], relu)
        return y.reshape(B, H, W, cout)
    if stride == 1 and k == 3 and padding == dilation:
        w_taps = jnp.transpose(w, (2, 3, 1, 0)).reshape(9, cin, cout)
        res = None if residual is None else residual.astype(jnp.bfloat16)
        return _fused_conv2d(xb, w_taps.astype(jnp.bfloat16),
                             p["scale"], p["bias"], relu=relu,
                             dilation=dilation, residual=res)
    # stride-2 convs: small outputs, plain im2col + matmul.
    assert residual is None
    patches, OH, OW, K = _extract_patches2d(xb, k, stride, padding, dilation)
    B = x.shape[0]
    a = patches.reshape(B * OH * OW, K)
    wm = jnp.transpose(w, (2, 3, 1, 0)).reshape(K, cout).astype(jnp.bfloat16)
    y = pallas_matmul_affine(a, wm, p["scale"], p["bias"], relu)
    return y.reshape(B, OH, OW, cout)


@functools.partial(jax.jit, static_argnames=("stride", "padding", "relu"))
def conv3d_bn(x, p, *, stride=1, padding=1, relu=True, residual=None):
    """x: (B,D,H,W,Cin); p['w']: (Cout,Cin,k,k,k)."""
    w = p["w"]
    cout, cin, k = w.shape[0], w.shape[1], w.shape[2]
    xb = x.astype(jnp.bfloat16)
    if stride == 1 and k == 3 and padding == 1:
        w_taps = jnp.transpose(w, (2, 3, 4, 1, 0)).reshape(27, cin, cout)
        res = None if residual is None else residual.astype(jnp.bfloat16)
        return _fused_conv3d(xb, w_taps.astype(jnp.bfloat16),
                             p["scale"], p["bias"], relu=relu, residual=res)
    assert residual is None
    patches, OD, OH, OW, K = _extract_patches3d(xb, k, stride, padding)
    B = x.shape[0]
    a = patches.reshape(B * OD * OH * OW, K)
    wm = jnp.transpose(w, (2, 3, 4, 1, 0)).reshape(K, cout).astype(jnp.bfloat16)
    y = pallas_matmul_affine(a, wm, p["scale"], p["bias"], relu)
    return y.reshape(B, OD, OH, OW, cout)


@jax.jit
def deconv3d_bn(x, p):
    """ConvTranspose3d(k=4, stride=2, padding=1, bias=False) + BN (no ReLU).

    All 8 sub-pixel output phases are computed in ONE fused-tap conv
    (block-sparse (27*Cin, 8*Cout) weight, lane-dense N), then interleaved.
    """
    w = p["w"]                                   # (Cin, Cout, 4, 4, 4)
    cin, cout = w.shape[0], w.shape[1]
    B, D, H, W, _ = x.shape
    wt = jnp.transpose(w, (2, 3, 4, 0, 1))       # (4,4,4,Cin,Cout)
    wb = jnp.zeros((3, 3, 3, cin, 8, cout), jnp.float32)
    for pd in (0, 1):
        for ph in (0, 1):
            for pw in (0, 1):
                phase = pd * 4 + ph * 2 + pw
                for rd in (0, 1):
                    for rh in (0, 1):
                        for rw in (0, 1):
                            td, th, tw = pd + rd, ph + rh, pw + rw
                            kd, kh, kw = 3 - pd - 2 * rd, 3 - ph - 2 * rh, 3 - pw - 2 * rw
                            wb = wb.at[td, th, tw, :, phase, :].set(wt[kd, kh, kw])
    w_taps = wb.reshape(27, cin, 8 * cout).astype(jnp.bfloat16)
    scale8 = jnp.tile(p["scale"], 8)
    bias8 = jnp.tile(p["bias"], 8)
    y = _fused_conv3d(x.astype(jnp.bfloat16), w_taps, scale8, bias8,
                      relu=False, residual=None)          # (B,D,H,W,8*Cout)
    y = y.reshape(B, D, H, W, 2, 2, 2, cout)
    y = jnp.transpose(y, (0, 1, 4, 2, 5, 3, 6, 7))
    return y.reshape(B, 2 * D, 2 * H, 2 * W, cout)


# --------------------------------------------------------------------------
# Small JAX glue: avg-pool and align_corners linear interpolation.
# --------------------------------------------------------------------------
def _avg_pool2d(x, k):
    B, H, W, C = x.shape
    y = x.reshape(B, H // k, k, W // k, k, C).astype(jnp.float32)
    return y.mean(axis=(2, 4)).astype(x.dtype)


def _lin_interp_axis(x, new_size, axis):
    """1-D linear interpolation with align_corners=True along `axis`."""
    old = x.shape[axis]
    if old == new_size:
        return x
    if old == 1:
        reps = [1] * x.ndim
        reps[axis] = new_size
        return jnp.tile(x, reps)
    pos = jnp.arange(new_size, dtype=jnp.float32) * ((old - 1) / (new_size - 1))
    lo = jnp.clip(jnp.floor(pos).astype(jnp.int32), 0, old - 2)
    hi = lo + 1
    w = pos - lo.astype(jnp.float32)
    xlo = jnp.take(x, lo, axis=axis)
    xhi = jnp.take(x, hi, axis=axis)
    shp = [1] * x.ndim
    shp[axis] = new_size
    w = w.reshape(shp)
    return (xlo * (1.0 - w) + xhi * w).astype(x.dtype)


# --------------------------------------------------------------------------
# Network structure (mirrors the PyTorch module).
# --------------------------------------------------------------------------
def resblock_apply(x, p, stride=1, dilation=1):
    pad = dilation if dilation > 1 else 1
    out = conv2d_bn(x, p["conv1"], stride=stride, padding=pad,
                    dilation=dilation, relu=True)
    if p["adjust"] is not None:
        shortcut = conv2d_bn(x, p["adjust"], stride=stride, padding=0,
                             dilation=1, relu=False)
    else:
        shortcut = x
    # residual add fused into the second conv's epilogue (after its ReLU).
    return conv2d_bn(out, p["conv2"], stride=1, padding=pad,
                     dilation=dilation, relu=True, residual=shortcut)


def spp_apply(conv2_16, conv4_3, p):
    B, H, W, _ = conv4_3.shape
    outs = [conv2_16, conv4_3]
    for pool_k, bp in zip((64, 32, 16, 8), p["branches"]):
        y = _avg_pool2d(conv4_3, pool_k)
        y = conv2d_bn(y, bp, stride=1, padding=0, dilation=1, relu=True)
        y = _lin_interp_axis(y, H, 1)
        y = _lin_interp_axis(y, W, 2)
        outs.append(y)
    cat = jnp.concatenate(outs, axis=-1)                     # (B, H, W, 320)
    y = conv2d_bn(cat, p["fusion1"], stride=1, padding=1, relu=True)
    y = conv2d_bn(y, p["fusion2"], stride=1, padding=0, relu=False)
    return y                                                 # (B, H, W, 32)


def feature_extraction_apply(x, fe):
    out = conv2d_bn(x, fe["conv0_1"], stride=2, padding=1, relu=True)
    out = conv2d_bn(out, fe["conv0_2"], stride=1, padding=1, relu=True)
    out = conv2d_bn(out, fe["conv0_3"], stride=1, padding=1, relu=True)
    for p in fe["conv1_x"]:
        out = resblock_apply(out, p, stride=1, dilation=1)
    for i, p in enumerate(fe["conv2_x"]):
        out = resblock_apply(out, p, stride=2 if i == 0 else 1, dilation=1)
    conv2_16 = out
    for p in fe["conv3_x"]:
        out = resblock_apply(out, p, stride=1, dilation=2)
    for p in fe["conv4_x"]:
        out = resblock_apply(out, p, stride=1, dilation=4)
    conv4_3 = out
    return spp_apply(conv2_16, conv4_3, fe["spp"])


@functools.partial(jax.jit, static_argnames=("d4",))
def build_cost_volume(fl, fr, d4):
    """fl, fr: (B, H/4, W/4, F) -> cost (B, D/4, H/4, W/4, 2F)."""
    B, H, W, F = fl.shape
    wcoord = jnp.arange(W)
    levels = []
    for i in range(d4):
        if i == 0:
            l, r = fl, fr
        else:
            mask = (wcoord >= i)[None, None, :, None]
            l = jnp.where(mask, fl, 0.0)
            r = jnp.concatenate(
                [jnp.zeros_like(fr[:, :, :i, :]), fr[:, :, :W - i, :]], axis=2)
        levels.append(jnp.concatenate([l, r], axis=-1))
    return jnp.stack(levels, axis=1)


def seq3d(x, plist, strides, residual=None):
    n = len(plist)
    for i, (p, s) in enumerate(zip(plist, strides)):
        r = residual if i == n - 1 else None
        x = conv3d_bn(x, p, stride=s, padding=1, relu=True, residual=r)
    return x


def psmnet_forward(left, right, params, max_disparity, training=False):
    """left/right: (B, 3, H, W) float32 (NCHW, like PyTorch)."""
    B = left.shape[0]
    xl = jnp.transpose(left, (0, 2, 3, 1))
    xr = jnp.transpose(right, (0, 2, 3, 1))
    # Batch L and R through the feature extractor in one call.
    f = feature_extraction_apply(jnp.concatenate([xl, xr], axis=0),
                                 params["fe"])               # (2B, H/4, W/4, 32)
    fl, fr = f[:B], f[B:]
    p = params["agg"]

    d4 = max_disparity // 4
    cost = build_cost_volume(fl, fr, d4=d4)                  # (B, D/4, H/4, W/4, 64)

    c0 = seq3d(cost, p["conv3d_0"], (1, 1))
    c1 = seq3d(c0, p["conv3d_1"], (1, 1))
    s11 = seq3d(c1, p["stack1_1"], (2, 1))
    s12 = seq3d(s11, p["stack1_2"], (2, 1))
    s13 = deconv3d_bn(s12, p["stack1_3"]) + s11
    s14 = deconv3d_bn(s13, p["stack1_4"]) + c1
    s21 = seq3d(s14, p["stack2_1"], (2, 1), residual=s13)
    s22 = seq3d(s21, p["stack2_2"], (2, 1))
    s23 = deconv3d_bn(s22, p["stack2_3"]) + s11
    s24 = deconv3d_bn(s23, p["stack2_4"]) + c1
    s31 = seq3d(s24, p["stack3_1"], (2, 1), residual=s23)
    s32 = seq3d(s31, p["stack3_2"], (2, 1))
    s33 = deconv3d_bn(s32, p["stack3_3"]) + s11
    s34 = deconv3d_bn(s33, p["stack3_4"]) + c1

    o1 = seq3d(s14, p["output_1"], (1, 1))
    o2 = seq3d(s24, p["output_2"], (1, 1), residual=o1)
    o3 = seq3d(s34, p["output_3"], (1, 1), residual=o2)

    _, H4, W4, _ = fl.shape
    D, H, W = max_disparity, 4 * H4, 4 * W4

    def head(o):
        o = (-o[..., 0]).astype(jnp.float32)                 # (B, D/4, H/4, W/4)
        o = _lin_interp_axis(o, D, 1)                        # trilinear, align_corners=True
        o = _lin_interp_axis(o, H, 2)
        o = _lin_interp_axis(o, W, 3)
        return disparity_regression(o)                       # Pallas softmax+regression

    if training:
        return head(o1), head(o2), head(o3)
    return head(o3)


# --------------------------------------------------------------------------
# Deterministic synthetic parameters (eval-mode BN folded to scale/bias).
# --------------------------------------------------------------------------
class _KeyGen:
    def __init__(self, seed=0):
        self.key = jax.random.PRNGKey(seed)
        self.i = 0

    def __call__(self):
        self.i += 1
        return jax.random.fold_in(self.key, self.i)


def _bn_affine(kg, c, eps=1e-5):
    gamma = 1.0 + 0.05 * jax.random.normal(kg(), (c,), jnp.float32)
    beta = 0.05 * jax.random.normal(kg(), (c,), jnp.float32)
    running_mean = jnp.zeros((c,), jnp.float32)
    running_var = jnp.ones((c,), jnp.float32)
    scale = gamma / jnp.sqrt(running_var + eps)
    bias = beta - running_mean * scale
    return scale, bias


def _cbn2d(kg, cin, cout, k, bn=True):
    w = jax.random.normal(kg(), (cout, cin, k, k), jnp.float32) / np.sqrt(cin * k * k)
    if bn:
        scale, bias = _bn_affine(kg, cout)
    else:
        scale, bias = jnp.ones((cout,), jnp.float32), jnp.zeros((cout,), jnp.float32)
    return dict(w=w, scale=scale, bias=bias)


def _cbn3d(kg, cin, cout, k=3):
    w = jax.random.normal(kg(), (cout, cin, k, k, k), jnp.float32) / np.sqrt(cin * k ** 3)
    scale, bias = _bn_affine(kg, cout)
    return dict(w=w, scale=scale, bias=bias)


def _deconv3d_params(kg, cin, cout, k=4):
    w = jax.random.normal(kg(), (cin, cout, k, k, k), jnp.float32) / np.sqrt(cin * k ** 3)
    scale, bias = _bn_affine(kg, cout)
    return dict(w=w, scale=scale, bias=bias)


def _resblock_params(kg, cin, planes, stride=1):
    adjust = _cbn2d(kg, cin, planes, 1) if (stride != 1 or cin != planes) else None
    return dict(conv1=_cbn2d(kg, cin, planes, 3),
                conv2=_cbn2d(kg, planes, planes, 3),
                adjust=adjust)


def make_psmnet_params(seed=0):
    kg = _KeyGen(seed)
    fe = dict(
        conv0_1=_cbn2d(kg, 3, 32, 3),
        conv0_2=_cbn2d(kg, 32, 32, 3),
        conv0_3=_cbn2d(kg, 32, 32, 3),
        conv1_x=[_resblock_params(kg, 32, 32) for _ in range(3)],
        conv2_x=[_resblock_params(kg, 32, 64, stride=2)]
                + [_resblock_params(kg, 64, 64) for _ in range(15)],
        conv3_x=[_resblock_params(kg, 64, 128)]
                + [_resblock_params(kg, 128, 128) for _ in range(2)],
        conv4_x=[_resblock_params(kg, 128, 128) for _ in range(3)],
        spp=dict(branches=[_cbn2d(kg, 128, 32, 1) for _ in range(4)],
                 fusion1=_cbn2d(kg, 320, 128, 3),
                 fusion2=_cbn2d(kg, 128, 32, 1, bn=False)),
    )
    agg = dict(
        conv3d_0=[_cbn3d(kg, 64, 32), _cbn3d(kg, 32, 32)],
        conv3d_1=[_cbn3d(kg, 32, 32), _cbn3d(kg, 32, 32)],
    )
    for s in (1, 2, 3):
        agg["stack%d_1" % s] = [_cbn3d(kg, 32, 64), _cbn3d(kg, 64, 64)]
        agg["stack%d_2" % s] = [_cbn3d(kg, 64, 64), _cbn3d(kg, 64, 64)]
        agg["stack%d_3" % s] = _deconv3d_params(kg, 64, 64)
        agg["stack%d_4" % s] = _deconv3d_params(kg, 64, 32)
    for s in (1, 2, 3):
        agg["output_%d" % s] = [_cbn3d(kg, 32, 32), _cbn3d(kg, 32, 1)]
    return dict(fe=fe, agg=agg)


# --------------------------------------------------------------------------
if __name__ == "__main__":
    # The module's SPP uses AvgPool2d(64) on the H/4 x W/4 feature map, so
    # the smallest consistent input is 256 x 256.  max_disparity must be a
    # multiple of 16 so the 3-D hourglass down/up-sampling shapes match.
    B, H, W = 1, 256, 256
    MAX_DISPARITY = 16

    key = jax.random.PRNGKey(0)
    k_l, k_r = jax.random.split(key)
    left = jax.random.normal(k_l, (B, 3, H, W), jnp.float32)
    right = jax.random.normal(k_r, (B, 3, H, W), jnp.float32)

    params = make_psmnet_params(seed=0)

    out = psmnet_forward(left, right, params, MAX_DISPARITY, training=False)
    out = jax.block_until_ready(out)

    assert out.shape == (B, H, W), out.shape
    assert bool(jnp.all(jnp.isfinite(out)))
    print("KERNEL_OK")
</pallas_src>

<mosaic_0001>
module attributes {stable_mosaic.version = 11 : i64} {
  func.func @_mm_affine_kernel(%arg0: i32, %arg1: memref<1024x27xbf16, #tpu.memory_space<vmem>>, %arg2: memref<27x32xbf16, #tpu.memory_space<vmem>>, %arg3: memref<1x32xf32, #tpu.memory_space<vmem>>, %arg4: memref<1x32xf32, #tpu.memory_space<vmem>>, %arg5: memref<1024x32xbf16, #tpu.memory_space<vmem>>) attributes {dimension_semantics = [#tpu.dimension_semantics<parallel>], iteration_bounds = array<i64: 32>, scalar_prefetch = 0 : i64, scratch_operands = 0 : i64, tpu.core_type = #tpu.core_type<tc>, window_params = [{transform_indices = @transform_0, window_bounds = array<i64: 1024, 27>}, {pipeline_mode = #tpu.pipeline_mode<synchronous>, transform_indices = @transform_1, window_bounds = array<i64: 27, 32>}, {pipeline_mode = #tpu.pipeline_mode<synchronous>, transform_indices = @transform_2, window_bounds = array<i64: 1, 32>}, {pipeline_mode = #tpu.pipeline_mode<synchronous>, transform_indices = @transform_3, window_bounds = array<i64: 1, 32>}, {transform_indices = @transform_4, window_bounds = array<i64: 1024, 32>}]} {
    %c0 = arith.constant 0 : index
    %c0_0 = arith.constant 0 : index
    %0 = vector.load %arg1[%c0, %c0_0] : memref<1024x27xbf16, #tpu.memory_space<vmem>>, vector<1024x27xbf16>
    %c0_1 = arith.constant 0 : index
    %c0_2 = arith.constant 0 : index
    %1 = vector.load %arg2[%c0_1, %c0_2] : memref<27x32xbf16, #tpu.memory_space<vmem>>, vector<27x32xbf16>
    %cst = arith.constant dense<0.000000e+00> : vector<1024x32xf32>
    %2 = tpu.matmul %0, %1, %cst {dimension_numbers = #tpu.dot_dimension_numbers<[1], [0], [0], [1], [0, 0, 1, 1], [], []>} : vector<1024x27xbf16>, vector<27x32xbf16>, vector<1024x32xf32> -> vector<1024x32xf32>
    %c0_3 = arith.constant 0 : index
    %c0_4 = arith.constant 0 : index
    %3 = vector.load %arg3[%c0_3, %c0_4] : memref<1x32xf32, #tpu.memory_space<vmem>>, vector<1x32xf32>
    %4 = vector.broadcast %3 : vector<1x32xf32> to vector<1024x32xf32>
    %5 = arith.mulf %2, %4 : vector<1024x32xf32>
    %c0_5 = arith.constant 0 : index
    %c0_6 = arith.constant 0 : index
    %6 = vector.load %arg4[%c0_5, %c0_6] : memref<1x32xf32, #tpu.memory_space<vmem>>, vector<1x32xf32>
    %7 = vector.broadcast %6 : vector<1x32xf32> to vector<1024x32xf32>
    %8 = arith.addf %5, %7 : vector<1024x32xf32>
    %cst_7 = arith.constant 0.000000e+00 : f32
    %9 = vector.broadcast %cst_7 : f32 to vector<1024x32xf32>
    %10 = arith.maximumf %8, %9 : vector<1024x32xf32>
    %11 = arith.truncf %10 : vector<1024x32xf32> to vector<1024x32xbf16>
    %c0_8 = arith.constant 0 : index
    %c0_9 = arith.constant 0 : index
    %12 = vector.load %arg5[%c0_8, %c0_9] : memref<1024x32xbf16, #tpu.memory_space<vmem>>, vector<1024x32xbf16>
    tpu.vector_store %arg5[%c0_8, %c0_9], %11 {strides = array<i32>} : memref<1024x32xbf16, #tpu.memory_space<vmem>>, vector<1024x32xbf16>,
    return
  }
  func.func @transform_0(%arg0: i32) -> (i32, i32) {
    %c0_i32 = arith.constant 0 : i32
    %c0_i32_0 = arith.constant 0 : i32
    return %arg0, %c0_i32 : i32, i32
  }
  func.func @transform_1(%arg0: i32) -> (i32, i32) {
    %c0_i32 = arith.constant 0 : i32
    %c0_i32_0 = arith.constant 0 : i32
    %c0_i32_1 = arith.constant 0 : i32
    return %c0_i32, %c0_i32_0 : i32, i32
  }
  func.func @transform_2(%arg0: i32) -> (i32, i32) {
    %c0_i32 = arith.constant 0 : i32
    %c0_i32_0 = arith.constant 0 : i32
    %c0_i32_1 = arith.constant 0 : i32
    return %c0_i32, %c0_i32_0 : i32, i32
  }
  func.func @transform_3(%arg0: i32) -> (i32, i32) {
    %c0_i32 = arith.constant 0 : i32
    %c0_i32_0 = arith.constant 0 : i32
    %c0_i32_1 = arith.constant 0 : i32
    return %c0_i32, %c0_i32_0 : i32, i32
  }
  func.func @transform_4(%arg0: i32) -> (i32, i32) {
    %c0_i32 = arith.constant 0 : i32
    %c0_i32_0 = arith.constant 0 : i32
    return %arg0, %c0_i32 : i32, i32
  }
}

</mosaic_0001>

<bundles_post_ra>
// kernel: conv2d_bn.1
= control target key start
LH: loop header
LB: loop body
LE: loop exit
PB: predicated region body
PF: predicated region fallthrough
CT: control target
= control target key end

     0   :  { %s2357_s15 = smov 0   ;;  %s3054_s0 = inlined_call_operand.vmem [shape: bf16[32768,27], index: 0, kind: input, shape index: {}]   ;;  %s3055_s1 = inlined_call_operand.vmem [shape: bf16[27,32], index: 1, kind: input, shape index: {}]   ;;  %s3056_s2 = inlined_call_operand.vmem [shape: f32[1,32], index: 2, kind: input, shape index: {}]   ;;  %s3057_s3 = inlined_call_operand.vmem [shape: f32[1,32], index: 3, kind: input, shape index: {}]   ;;  %s3058_s4 = inlined_call_operand.vmem [shape: bf16[32768,32], index: 4, kind: output, shape index: {}]  }
   0x1 LB: > { %s1899_s16 = sadd.s32 4294967295, %s2329_s15   ;;  %p1903_p0 = scmp.ge.s32.totalorder %s2329_s15, 1  ;;  %s2329_s15 = sphi %s2357_s15, %s14_s15  }
   0x2   : > { %p163_p1 = scmp.lt.s32.totalorder %s2329_s15, 33 }
   0x4   : > { %p164_p2 = pnand %p1903_p0, %p163_p1 }
   0x5   : > { %s1904_s21 = sshll.u32 (!%p164_p2), %s1899_s16, 7 }
   0x6   : > { %167 = sbr.rel (%p164_p2) target bundleno = 415 (0x19f), region = 36  ;;  %p190_p3 = scmp.lt.s32.totalorder (!%p164_p2), %s1904_s21, 4095 }
   0xb   : > { %v2170_v0 = vld [vmem:[%s3055_s1 + $0x8] sm:$0xf]  ;;  %v2303_v1 = vld [vmem:[%s3055_s1 + $0x8] sm:$0x30]  ;;  %vm858_vm0 = vcmask 1044480   ;;  %vm859_vm1 = vcmask 1045504  }
   0xc   : > { %v2171_v2 = vor.u32 %v2303_v1, %v2170_v0  ;;  %v2331_v3 = vmov 65535   ;;  %s3060_s21 = smov (!%p190_p3, %s1904_s21), 4095  ;;  %v2302_v7 = vld [vmem:[%s3055_s1] sm:$0xff]  ;;  %vm665_vm2 = vcmask 220160   ;;  %vm1714_vm3 = vcmask 257024  }
   0xd   : > { %v860_v4 = vsel %vm858_vm0, 4294967295, %v2331_v3  ;;  %s1905_s24 = sshll.u32 %s3060_s21, 2  ;;  %v2451_v40 = vld [vmem:[%s3056_s2] ss:$0 sm:$0xff] }
   0xe   : > { %v861_v5 = vsel %vm859_vm1, %v860_v4, 0  ;;  %s2382_s27 = scalar_lea.vmem %s3054_s0, %s1905_s24  ;;  %v2456_v41 = vld [vmem:[%s3057_s3] ss:$0 sm:$0xff]  ;;  %s2475_s8 = scalar_lea.vmem %s3058_s4, %s1905_s24 }
   0xf   : > { %v863_v6 = vand.u32 %v2171_v2, %v861_v5  ;;  %v2238_v8 = vld [vmem:[%s2382_s27] sm:$0xff]  ;;  %v2239_v12 = vld [vmem:[%s2382_s27 + $0x8] sm:$0xff]  ;;  %v2240_v16 = vld [vmem:[%s2382_s27 + $0x10] sm:$0xff] }
  0x10   : > { %v2254_v9 = vld [vmem:[%s2382_s27 + $0x80] sm:$0xff]  ;;  %v2255_v13 = vld [vmem:[%s2382_s27 + $0x88] sm:$0xff]  ;;  %v2256_v17 = vld [vmem:[%s2382_s27 + $0x90] sm:$0xff] }
  0x11   : > { %871 = vmatpush.bf16.msra.mxu0 %v863_v6  ;;  %2304 = vmatpush.bf16.msra.mxu1 %v863_v6  ;;  %v2270_v10 = vld [vmem:[%s2382_s27 + $0x100] sm:$0xff]  ;;  %v2271_v14 = vld [vmem:[%s2382_s27 + $0x108] sm:$0xff]  ;;  %v2272_v18 = vld [vmem:[%s2382_s27 + $0x110] sm:$0xff] }
  0x12   : > { %2305 = vmatpush.bf16.msra.mxu2 %v863_v6  ;;  %2306 = vmatpush.bf16.msra.mxu3 %v863_v6  ;;  %v2286_v11 = vld [vmem:[%s2382_s27 + $0x180] sm:$0xff]  ;;  %v2287_v15 = vld [vmem:[%s2382_s27 + $0x188] sm:$0xff]  ;;  %v2288_v19 = vld [vmem:[%s2382_s27 + $0x190] sm:$0xff] }
  0x13   : > { %v2241_v20 = vld [vmem:[%s2382_s27 + $0x18] sm:$0xff]  ;;  %v2242_v24 = vld [vmem:[%s2382_s27 + $0x20] sm:$0xff]  ;;  %v2243_v28 = vld [vmem:[%s2382_s27 + $0x28] sm:$0xff] }
  0x14   : > { %v2257_v21 = vld [vmem:[%s2382_s27 + $0x98] sm:$0xff]  ;;  %v2258_v25 = vld [vmem:[%s2382_s27 + $0xa0] sm:$0xff]  ;;  %v2259_v29 = vld [vmem:[%s2382_s27 + $0xa8] sm:$0xff] }
  0x15   : > { %872 = vmatpush.bf16.msra.mxu0 %v2302_v7  ;;  %2307 = vmatpush.bf16.msra.mxu1 %v2302_v7  ;;  %v2273_v22 = vld [vmem:[%s2382_s27 + $0x118] sm:$0xff]  ;;  %v2274_v26 = vld [vmem:[%s2382_s27 + $0x120] sm:$0xff]  ;;  %v2275_v30 = vld [vmem:[%s2382_s27 + $0x128] sm:$0xff] }
  0x16   : > { %2308 = vmatpush.bf16.msra.mxu2 %v2302_v7  ;;  %2309 = vmatpush.bf16.msra.mxu3 %v2302_v7  ;;  %v2289_v23 = vld [vmem:[%s2382_s27 + $0x198] sm:$0xff]  ;;  %v2290_v27 = vld [vmem:[%s2382_s27 + $0x1a0] sm:$0xff]  ;;  %v2291_v31 = vld [vmem:[%s2382_s27 + $0x1a8] sm:$0xff] }
  0x17   : > { %v2244_v32 = vld [vmem:[%s2382_s27 + $0x30] sm:$0xff]  ;;  %v2245_v36 = vld [vmem:[%s2382_s27 + $0x38] sm:$0xff]  ;;  %v2246_v42 = vld [vmem:[%s2382_s27 + $0x40] sm:$0xff] }
  0x18   : > { %2172 = vmatmul.msk.bf16.vlgmr.msra.gmra.mxu0 %vm665_vm2, %v2238_v8  ;;  %2188 = vmatmul.msk.bf16.vlgmr.msra.gmra.mxu1 %vm665_vm2, %v2254_v9  ;;  %v2260_v33 = vld [vmem:[%s2382_s27 + $0xb0] sm:$0xff]  ;;  %v2261_v37 = vld [vmem:[%s2382_s27 + $0xb8] sm:$0xff]  ;;  %v2262_v43 = vld [vmem:[%s2382_s27 + $0xc0] sm:$0xff] }
  0x19   : > { %2204 = vmatmul.msk.bf16.vlgmr.msra.gmra.mxu2 %vm665_vm2, %v2270_v10  ;;  %2220 = vmatmul.msk.bf16.vlgmr.msra.gmra.mxu3 %vm665_vm2, %v2286_v11  ;;  %v2276_v34 = vld [vmem:[%s2382_s27 + $0x130] sm:$0xff]  ;;  %v2277_v38 = vld [vmem:[%s2382_s27 + $0x138] sm:$0xff]  ;;  %v2278_v46 = vld [vmem:[%s2382_s27 + $0x140] sm:$0xff] }
  0x1a   : > { %v2292_v35 = vld [vmem:[%s2382_s27 + $0x1b0] sm:$0xff]  ;;  %v2293_v39 = vld [vmem:[%s2382_s27 + $0x1b8] sm:$0xff]  ;;  %v2294_v47 = vld [vmem:[%s2382_s27 + $0x1c0] sm:$0xff] }
  0x28   : > { %2173 = vmatmul.msk.bf16.gmra.mxu0 %vm665_vm2, %v2239_v12  ;;  %2189 = vmatmul.msk.bf16.gmra.mxu1 %vm665_vm2, %v2255_v13 }
  0x29   : > { %2205 = vmatmul.msk.bf16.gmra.mxu2 %vm665_vm2, %v2271_v14  ;;  %2221 = vmatmul.msk.bf16.gmra.mxu3 %vm665_vm2, %v2287_v15  ;;  %v2247_v14 = vld [vmem:[%s2382_s27 + $0x48] sm:$0xff] }
  0x2a   : > { %v2263_v15 = vld [vmem:[%s2382_s27 + $0xc8] sm:$0xff] }
  0x38   : > { %2174 = vmatmul.msk.bf16.gmra.mxu0 %vm665_vm2, %v2240_v16  ;;  %2190 = vmatmul.msk.bf16.gmra.mxu1 %vm665_vm2, %v2256_v17 }
  0x39   : > { %2206 = vmatmul.msk.bf16.gmra.mxu2 %vm665_vm2, %v2272_v18  ;;  %2222 = vmatmul.msk.bf16.gmra.mxu3 %vm665_vm2, %v2288_v19 }
  0x48   : > { %2175 = vmatmul.msk.bf16.gmra.mxu0 %vm665_vm2, %v2241_v20  ;;  %2191 = vmatmul.msk.bf16.gmra.mxu1 %vm665_vm2, %v2257_v21  ;;  %v2279_v20 = vld [vmem:[%s2382_s27 + $0x148] sm:$0xff] }
  0x49   : > { %2207 = vmatmul.msk.bf16.gmra.mxu2 %vm665_vm2, %v2273_v22  ;;  %2223 = vmatmul.msk.bf16.gmra.mxu3 %vm665_vm2, %v2289_v23  ;;  %v2295_v21 = vld [vmem:[%s2382_s27 + $0x1c8] sm:$0xff] }
  0x58   : > { %2176 = vmatmul.msk.bf16.gmra.mxu0 %vm665_vm2, %v2242_v24  ;;  %2192 = vmatmul.msk.bf16.gmra.mxu1 %vm665_vm2, %v2258_v25 }
  0x59   : > { %2208 = vmatmul.msk.bf16.gmra.mxu2 %vm665_vm2, %v2274_v26  ;;  %2224 = vmatmul.msk.bf16.gmra.mxu3 %vm665_vm2, %v2290_v27 }
  0x68   : > { %2177 = vmatmul.msk.bf16.gmra.mxu0 %vm665_vm2, %v2243_v28  ;;  %2193 = vmatmul.msk.bf16.gmra.mxu1 %vm665_vm2, %v2259_v29 }
  0x69   : > { %2209 = vmatmul.msk.bf16.gmra.mxu2 %vm665_vm2, %v2275_v30  ;;  %2225 = vmatmul.msk.bf16.gmra.mxu3 %vm665_vm2, %v2291_v31 }
  0x78   : > { %2178 = vmatmul.msk.bf16.gmra.mxu0 %vm665_vm2, %v2244_v32  ;;  %2194 = vmatmul.msk.bf16.gmra.mxu1 %vm665_vm2, %v2260_v33 }
  0x79   : > { %2210 = vmatmul.msk.bf16.gmra.mxu2 %vm665_vm2, %v2276_v34  ;;  %2226 = vmatmul.msk.bf16.gmra.mxu3 %vm665_vm2, %v2292_v35 }
  0x88   : > { %2179 = vmatmul.msk.bf16.gmra.mxu0 %vm665_vm2, %v2245_v36  ;;  %2195 = vmatmul.msk.bf16.gmra.mxu1 %vm665_vm2, %v2261_v37 }
  0x89   : > { %2211 = vmatmul.msk.bf16.gmra.mxu2 %vm665_vm2, %v2277_v38  ;;  %2227 = vmatmul.msk.bf16.gmra.mxu3 %vm665_vm2, %v2293_v39 }
  0x95   : > { %v874_v44 = vpop.f32.mrf.mxu0  ;;  %v954_v45 = vpop.f32.mrf.mxu1 }
  0x96   : > { %v1198_v48 = vmul.f32 %v2451_v40, %v874_v44  ;;  %v1230_v49 = vmul.f32 %v2451_v40, %v954_v45 }
  0x98   : > { %v1330_v50 = vadd.f32 %v2456_v41, %v1198_v48  ;;  %v1362_v51 = vadd.f32 %v2456_v41, %v1230_v49  ;;  %2180 = vmatmul.msk.bf16.gmra.mxu0 %vm665_vm2, %v2246_v42  ;;  %2196 = vmatmul.msk.bf16.gmra.mxu1 %vm665_vm2, %v2262_v43 }
  0x99   : > { %2212 = vmatmul.msk.bf16.gmra.mxu2 %vm665_vm2, %v2278_v46  ;;  %2228 = vmatmul.msk.bf16.gmra.mxu3 %vm665_vm2, %v2294_v47 }
  0x9a   : > { %v1458_v52 = vmax.f32 %v1330_v50, 0.0  ;;  %v1490_v53 = vmax.f32 %v1362_v51, 0.0 }
  0x9c   : > { %v1586_v54 = vpack.c.bf16 %v1458_v52, %v1458_v52  ;;  %v1618_v55 = vpack.c.bf16 %v1490_v53, %v1490_v53  ;;  %v1034_v56 = vpop.f32.mrf.mxu2  ;;  %v1114_v57 = vpop.f32.mrf.mxu3 }
  0x9d   : > { %v1262_v58 = vmul.f32 %v2451_v40, %v1034_v56  ;;  %v1294_v59 = vmul.f32 %v2451_v40, %v1114_v57  ;;  %v876_v60 = vpop.f32.mrf.mxu0  ;;  %v956_v61 = vpop.f32.mrf.mxu1 }
  0x9e   : > { %1715 = vst.msk [vmem:[%s2475_s8] sm:$0xf] %vm1714_vm3, %v1586_v54  ;;  %v1199_v62 = vmul.f32 %v2451_v40, %v876_v60  ;;  %v1231_v63 = vmul.f32 %v2451_v40, %v956_v61  ;;  %v2248_v60 = vld [vmem:[%s2382_s27 + $0x50] sm:$0xff] }
  0x9f   : > { %1747 = vst.msk [vmem:[%s2475_s8 + $0x80] sm:$0xf] %vm1714_vm3, %v1618_v55  ;;  %v1394_v0 = vadd.f32 %v2456_v41, %v1262_v58  ;;  %v1426_v1 = vadd.f32 %v2456_v41, %v1294_v59  ;;  %v2264_v61 = vld [vmem:[%s2382_s27 + $0xd0] sm:$0xff] }
  0xa0   : > { %v1331_v2 = vadd.f32 %v2456_v41, %v1199_v62  ;;  %v1363_v3 = vadd.f32 %v2456_v41, %v1231_v63 }
  0xa1   : > { %v1522_v4 = vmax.f32 %v1394_v0, 0.0  ;;  %v1554_v5 = vmax.f32 %v1426_v1, 0.0 }
  0xa2   : > { %v1459_v6 = vmax.f32 %v1331_v2, 0.0  ;;  %v1491_v7 = vmax.f32 %v1363_v3, 0.0  ;;  %v2280_v2 = vld [vmem:[%s2382_s27 + $0x150] sm:$0xff] }
  0xa3   : > { %v1650_v8 = vpack.c.bf16 %v1522_v4, %v1522_v4  ;;  %v1682_v9 = vpack.c.bf16 %v1554_v5, %v1554_v5  ;;  %v2296_v3 = vld [vmem:[%s2382_s27 + $0x1d0] sm:$0xff] }
  0xa4   : > { %v1587_v10 = vpack.c.bf16 %v1459_v6, %v1459_v6  ;;  %v1619_v11 = vpack.c.bf16 %v1491_v7, %v1491_v7  ;;  %v1036_v12 = vpop.f32.mrf.mxu2  ;;  %v1116_v13 = vpop.f32.mrf.mxu3 }
  0xa5   : > { %1779 = vst.msk [vmem:[%s2475_s8 + $0x100] sm:$0xf] %vm1714_vm3, %v1650_v8  ;;  %v1263_v16 = vmul.f32 %v2451_v40, %v1036_v12  ;;  %v1295_v17 = vmul.f32 %v2451_v40, %v1116_v13  ;;  %v879_v18 = vpop.f32.mrf.mxu0  ;;  %v959_v19 = vpop.f32.mrf.mxu1 }
  0xa6   : > { %1811 = vst.msk [vmem:[%s2475_s8 + $0x180] sm:$0xf] %vm1714_vm3, %v1682_v9  ;;  %v1200_v22 = vmul.f32 %v2451_v40, %v879_v18  ;;  %v1232_v23 = vmul.f32 %v2451_v40, %v959_v19 }
  0xa7   : > { %1716 = vst.msk [vmem:[%s2475_s8 + $0x4] sm:$0xf] %vm1714_vm3, %v1587_v10  ;;  %v1395_v24 = vadd.f32 %v2456_v41, %v1263_v16  ;;  %v1427_v25 = vadd.f32 %v2456_v41, %v1295_v17 }
  0xa8   : > { %1748 = vst.msk [vmem:[%s2475_s8 + $0x84] sm:$0xf] %vm1714_vm3, %v1619_v11  ;;  %v1332_v26 = vadd.f32 %v2456_v41, %v1200_v22  ;;  %v1364_v27 = vadd.f32 %v2456_v41, %v1232_v23  ;;  %2181 = vmatmul.msk.bf16.gmra.mxu0 %vm665_vm2, %v2247_v14  ;;  %2197 = vmatmul.msk.bf16.gmra.mxu1 %vm665_vm2, %v2263_v15 }
  0xa9   : > { %v1523_v28 = vmax.f32 %v1395_v24, 0.0  ;;  %v1555_v29 = vmax.f32 %v1427_v25, 0.0  ;;  %2213 = vmatmul.msk.bf16.gmra.mxu2 %vm665_vm2, %v2279_v20  ;;  %2229 = vmatmul.msk.bf16.gmra.mxu3 %vm665_vm2, %v2295_v21 }
  0xaa   : > { %v1460_v30 = vmax.f32 %v1332_v26, 0.0  ;;  %v1492_v31 = vmax.f32 %v1364_v27, 0.0 }
  0xab   : > { %v1651_v32 = vpack.c.bf16 %v1523_v28, %v1523_v28  ;;  %v1683_v33 = vpack.c.bf16 %v1555_v29, %v1555_v29 }
  0xac   : > { %v1588_v34 = vpack.c.bf16 %v1460_v30, %v1460_v30  ;;  %v1620_v35 = vpack.c.bf16 %v1492_v31, %v1492_v31  ;;  %v1039_v36 = vpop.f32.mrf.mxu2  ;;  %v1119_v37 = vpop.f32.mrf.mxu3 }
  0xad   : > { %1780 = vst.msk [vmem:[%s2475_s8 + $0x104] sm:$0xf] %vm1714_vm3, %v1651_v32  ;;  %v1264_v38 = vmul.f32 %v2451_v40, %v1039_v36  ;;  %v1296_v39 = vmul.f32 %v2451_v40, %v1119_v37  ;;  %v881_v42 = vpop.f32.mrf.mxu0  ;;  %v961_v43 = vpop.f32.mrf.mxu1 }
  0xae   : > { %1812 = vst.msk [vmem:[%s2475_s8 + $0x184] sm:$0xf] %vm1714_vm3, %v1683_v33  ;;  %v1201_v44 = vmul.f32 %v2451_v40, %v881_v42  ;;  %v1233_v45 = vmul.f32 %v2451_v40, %v961_v43  ;;  %v2249_v42 = vld [vmem:[%s2382_s27 + $0x58] sm:$0xff] }
  0xaf   : > { %1717 = vst.msk [vmem:[%s2475_s8 + $0x8] sm:$0xf] %vm1714_vm3, %v1588_v34  ;;  %v1396_v46 = vadd.f32 %v2456_v41, %v1264_v38  ;;  %v1428_v47 = vadd.f32 %v2456_v41, %v1296_v39  ;;  %v2265_v43 = vld [vmem:[%s2382_s27 + $0xd8] sm:$0xff] }
  0xb0   : > { %1749 = vst.msk [vmem:[%s2475_s8 + $0x88] sm:$0xf] %vm1714_vm3, %v1620_v35  ;;  %v1333_v48 = vadd.f32 %v2456_v41, %v1201_v44  ;;  %v1365_v49 = vadd.f32 %v2456_v41, %v1233_v45 }
  0xb1   : > { %v1524_v50 = vmax.f32 %v1396_v46, 0.0  ;;  %v1556_v51 = vmax.f32 %v1428_v47, 0.0 }
  0xb2   : > { %v1461_v52 = vmax.f32 %v1333_v48, 0.0  ;;  %v1493_v53 = vmax.f32 %v1365_v49, 0.0  ;;  %v2281_v48 = vld [vmem:[%s2382_s27 + $0x158] sm:$0xff] }
  0xb3   : > { %v1652_v54 = vpack.c.bf16 %v1524_v50, %v1524_v50  ;;  %v1684_v55 = vpack.c.bf16 %v1556_v51, %v1556_v51  ;;  %v2297_v49 = vld [vmem:[%s2382_s27 + $0x1d8] sm:$0xff] }
  0xb4   : > { %v1589_v56 = vpack.c.bf16 %v1461_v52, %v1461_v52  ;;  %v1621_v57 = vpack.c.bf16 %v1493_v53, %v1493_v53  ;;  %v1041_v58 = vpop.f32.mrf.mxu2  ;;  %v1121_v59 = vpop.f32.mrf.mxu3 }
  0xb5   : > { %1781 = vst.msk [vmem:[%s2475_s8 + $0x108] sm:$0xf] %vm1714_vm3, %v1652_v54  ;;  %v1265_v62 = vmul.f32 %v2451_v40, %v1041_v58  ;;  %v1297_v63 = vmul.f32 %v2451_v40, %v1121_v59  ;;  %v884_v0 = vpop.f32.mrf.mxu0  ;;  %v964_v1 = vpop.f32.mrf.mxu1 }
  0xb6   : > { %1813 = vst.msk [vmem:[%s2475_s8 + $0x188] sm:$0xf] %vm1714_vm3, %v1684_v55  ;;  %v1202_v4 = vmul.f32 %v2451_v40, %v884_v0  ;;  %v1234_v5 = vmul.f32 %v2451_v40, %v964_v1 }
  0xb7   : > { %1718 = vst.msk [vmem:[%s2475_s8 + $0xc] sm:$0xf] %vm1714_vm3, %v1589_v56  ;;  %v1397_v6 = vadd.f32 %v2456_v41, %v1265_v62  ;;  %v1429_v7 = vadd.f32 %v2456_v41, %v1297_v63 }
  0xb8   : > { %1750 = vst.msk [vmem:[%s2475_s8 + $0x8c] sm:$0xf] %vm1714_vm3, %v1621_v57  ;;  %v1334_v8 = vadd.f32 %v2456_v41, %v1202_v4  ;;  %v1366_v9 = vadd.f32 %v2456_v41, %v1234_v5  ;;  %2182 = vmatmul.msk.bf16.gmra.mxu0 %vm665_vm2, %v2248_v60  ;;  %2198 = vmatmul.msk.bf16.gmra.mxu1 %vm665_vm2, %v2264_v61 }
  0xb9   : > { %v1525_v10 = vmax.f32 %v1397_v6, 0.0  ;;  %v1557_v11 = vmax.f32 %v1429_v7, 0.0  ;;  %2214 = vmatmul.msk.bf16.gmra.mxu2 %vm665_vm2, %v2280_v2  ;;  %2230 = vmatmul.msk.bf16.gmra.mxu3 %vm665_vm2, %v2296_v3 }
  0xba   : > { %v1462_v12 = vmax.f32 %v1334_v8, 0.0  ;;  %v1494_v13 = vmax.f32 %v1366_v9, 0.0 }
  0xbb   : > { %v1653_v14 = vpack.c.bf16 %v1525_v10, %v1525_v10  ;;  %v1685_v15 = vpack.c.bf16 %v1557_v11, %v1557_v11 }
  0xbc   : > { %v1590_v16 = vpack.c.bf16 %v1462_v12, %v1462_v12  ;;  %v1622_v17 = vpack.c.bf16 %v1494_v13, %v1494_v13  ;;  %v1044_v18 = vpop.f32.mrf.mxu2  ;;  %v1124_v19 = vpop.f32.mrf.mxu3 }
  0xbd   : > { %1782 = vst.msk [vmem:[%s2475_s8 + $0x10c] sm:$0xf] %vm1714_vm3, %v1653_v14  ;;  %v1266_v20 = vmul.f32 %v2451_v40, %v1044_v18  ;;  %v1298_v21 = vmul.f32 %v2451_v40, %v1124_v19  ;;  %v886_v22 = vpop.f32.mrf.mxu0  ;;  %v966_v23 = vpop.f32.mrf.mxu1 }
  0xbe   : > { %1814 = vst.msk [vmem:[%s2475_s8 + $0x18c] sm:$0xf] %vm1714_vm3, %v1685_v15  ;;  %v1203_v24 = vmul.f32 %v2451_v40, %v886_v22  ;;  %v1235_v25 = vmul.f32 %v2451_v40, %v966_v23  ;;  %v2250_v22 = vld [vmem:[%s2382_s27 + $0x60] sm:$0xff] }
  0xbf   : > { %1719 = vst.msk [vmem:[%s2475_s8 + $0x10] sm:$0xf] %vm1714_vm3, %v1590_v16  ;;  %v1398_v26 = vadd.f32 %v2456_v41, %v1266_v20  ;;  %v1430_v27 = vadd.f32 %v2456_v41, %v1298_v21  ;;  %v2266_v23 = vld [vmem:[%s2382_s27 + $0xe0] sm:$0xff] }
  0xc0   : > { %1751 = vst.msk [vmem:[%s2475_s8 + $0x90] sm:$0xf] %vm1714_vm3, %v1622_v17  ;;  %v1335_v28 = vadd.f32 %v2456_v41, %v1203_v24  ;;  %v1367_v29 = vadd.f32 %v2456_v41, %v1235_v25 }
  0xc1   : > { %v1526_v30 = vmax.f32 %v1398_v26, 0.0  ;;  %v1558_v31 = vmax.f32 %v1430_v27, 0.0 }
  0xc2   : > { %v1463_v32 = vmax.f32 %v1335_v28, 0.0  ;;  %v1495_v33 = vmax.f32 %v1367_v29, 0.0  ;;  %v2282_v28 = vld [vmem:[%s2382_s27 + $0x160] sm:$0xff] }
  0xc3   : > { %v1654_v34 = vpack.c.bf16 %v1526_v30, %v1526_v30  ;;  %v1686_v35 = vpack.c.bf16 %v1558_v31, %v1558_v31  ;;  %v2298_v29 = vld [vmem:[%s2382_s27 + $0x1e0] sm:$0xff] }
  0xc4   : > { %v1591_v36 = vpack.c.bf16 %v1463_v32, %v1463_v32  ;;  %v1623_v37 = vpack.c.bf16 %v1495_v33, %v1495_v33  ;;  %v1046_v38 = vpop.f32.mrf.mxu2  ;;  %v1126_v39 = vpop.f32.mrf.mxu3 }
  0xc5   : > { %1783 = vst.msk [vmem:[%s2475_s8 + $0x110] sm:$0xf] %vm1714_vm3, %v1654_v34  ;;  %v1267_v44 = vmul.f32 %v2451_v40, %v1046_v38  ;;  %v1299_v45 = vmul.f32 %v2451_v40, %v1126_v39  ;;  %v889_v46 = vpop.f32.mrf.mxu0  ;;  %v969_v47 = vpop.f32.mrf.mxu1 }
  0xc6   : > { %1815 = vst.msk [vmem:[%s2475_s8 + $0x190] sm:$0xf] %vm1714_vm3, %v1686_v35  ;;  %v1204_v50 = vmul.f32 %v2451_v40, %v889_v46  ;;  %v1236_v51 = vmul.f32 %v2451_v40, %v969_v47 }
  0xc7   : > { %1720 = vst.msk [vmem:[%s2475_s8 + $0x14] sm:$0xf] %vm1714_vm3, %v1591_v36  ;;  %v1399_v52 = vadd.f32 %v2456_v41, %v1267_v44  ;;  %v1431_v53 = vadd.f32 %v2456_v41, %v1299_v45 }
  0xc8   : > { %1752 = vst.msk [vmem:[%s2475_s8 + $0x94] sm:$0xf] %vm1714_vm3, %v1623_v37  ;;  %v1336_v54 = vadd.f32 %v2456_v41, %v1204_v50  ;;  %v1368_v55 = vadd.f32 %v2456_v41, %v1236_v51  ;;  %2183 = vmatmul.msk.bf16.gmra.mxu0 %vm665_vm2, %v2249_v42  ;;  %2199 = vmatmul.msk.bf16.gmra.mxu1 %vm665_vm2, %v2265_v43 }
  0xc9   : > { %v1527_v56 = vmax.f32 %v1399_v52, 0.0  ;;  %v1559_v57 = vmax.f32 %v1431_v53, 0.0  ;;  %2215 = vmatmul.msk.bf16.gmra.mxu2 %vm665_vm2, %v2281_v48  ;;  %2231 = vmatmul.msk.bf16.gmra.mxu3 %vm665_vm2, %v2297_v49 }
  0xca   : > { %v1464_v58 = vmax.f32 %v1336_v54, 0.0  ;;  %v1496_v59 = vmax.f32 %v1368_v55, 0.0 }
  0xcb   : > { %v1655_v60 = vpack.c.bf16 %v1527_v56, %v1527_v56  ;;  %v1687_v61 = vpack.c.bf16 %v1559_v57, %v1559_v57 }
  0xcc   : > { %v1592_v62 = vpack.c.bf16 %v1464_v58, %v1464_v58  ;;  %v1624_v63 = vpack.c.bf16 %v1496_v59, %v1496_v59  ;;  %v1049_v0 = vpop.f32.mrf.mxu2  ;;  %v1129_v1 = vpop.f32.mrf.mxu3 }
  0xcd   : > { %1784 = vst.msk [vmem:[%s2475_s8 + $0x114] sm:$0xf] %vm1714_vm3, %v1655_v60  ;;  %v1268_v2 = vmul.f32 %v2451_v40, %v1049_v0  ;;  %v1300_v3 = vmul.f32 %v2451_v40, %v1129_v1  ;;  %v891_v4 = vpop.f32.mrf.mxu0  ;;  %v971_v5 = vpop.f32.mrf.mxu1 }
  0xce   : > { %1816 = vst.msk [vmem:[%s2475_s8 + $0x194] sm:$0xf] %vm1714_vm3, %v1687_v61  ;;  %v1205_v6 = vmul.f32 %v2451_v40, %v891_v4  ;;  %v1237_v7 = vmul.f32 %v2451_v40, %v971_v5  ;;  %v2251_v4 = vld [vmem:[%s2382_s27 + $0x68] sm:$0xff] }
  0xcf   : > { %1721 = vst.msk [vmem:[%s2475_s8 + $0x18] sm:$0xf] %vm1714_vm3, %v1592_v62  ;;  %v1400_v8 = vadd.f32 %v2456_v41, %v1268_v2  ;;  %v1432_v9 = vadd.f32 %v2456_v41, %v1300_v3  ;;  %v2267_v5 = vld [vmem:[%s2382_s27 + $0xe8] sm:$0xff] }
  0xd0   : > { %1753 = vst.msk [vmem:[%s2475_s8 + $0x98] sm:$0xf] %vm1714_vm3, %v1624_v63  ;;  %v1337_v10 = vadd.f32 %v2456_v41, %v1205_v6  ;;  %v1369_v11 = vadd.f32 %v2456_v41, %v1237_v7 }
  0xd1   : > { %v1528_v12 = vmax.f32 %v1400_v8, 0.0  ;;  %v1560_v13 = vmax.f32 %v1432_v9, 0.0 }
  0xd2   : > { %v1465_v14 = vmax.f32 %v1337_v10, 0.0  ;;  %v1497_v15 = vmax.f32 %v1369_v11, 0.0  ;;  %v2283_v10 = vld [vmem:[%s2382_s27 + $0x168] sm:$0xff] }
  0xd3   : > { %v1656_v16 = vpack.c.bf16 %v1528_v12, %v1528_v12  ;;  %v1688_v17 = vpack.c.bf16 %v1560_v13, %v1560_v13  ;;  %v2299_v11 = vld [vmem:[%s2382_s27 + $0x1e8] sm:$0xff] }
  0xd4   : > { %v1593_v18 = vpack.c.bf16 %v1465_v14, %v1465_v14  ;;  %v1625_v19 = vpack.c.bf16 %v1497_v15, %v1497_v15  ;;  %v1051_v20 = vpop.f32.mrf.mxu2  ;;  %v1131_v21 = vpop.f32.mrf.mxu3 }
  0xd5   : > { %1785 = vst.msk [vmem:[%s2475_s8 + $0x118] sm:$0xf] %vm1714_vm3, %v1656_v16  ;;  %v1269_v24 = vmul.f32 %v2451_v40, %v1051_v20  ;;  %v1301_v25 = vmul.f32 %v2451_v40, %v1131_v21  ;;  %v894_v26 = vpop.f32.mrf.mxu0  ;;  %v974_v27 = vpop.f32.mrf.mxu1 }
  0xd6   : > { %1817 = vst.msk [vmem:[%s2475_s8 + $0x198] sm:$0xf] %vm1714_vm3, %v1688_v17  ;;  %v1206_v30 = vmul.f32 %v2451_v40, %v894_v26  ;;  %v1238_v31 = vmul.f32 %v2451_v40, %v974_v27 }
  0xd7   : > { %1722 = vst.msk [vmem:[%s2475_s8 + $0x1c] sm:$0xf] %vm1714_vm3, %v1593_v18  ;;  %v1401_v32 = vadd.f32 %v2456_v41, %v1269_v24  ;;  %v1433_v33 = vadd.f32 %v2456_v41, %v1301_v25 }
  0xd8   : > { %1754 = vst.msk [vmem:[%s2475_s8 + $0x9c] sm:$0xf] %vm1714_vm3, %v1625_v19  ;;  %v1338_v34 = vadd.f32 %v2456_v41, %v1206_v30  ;;  %v1370_v35 = vadd.f32 %v2456_v41, %v1238_v31  ;;  %2184 = vmatmul.msk.bf16.gmra.mxu0 %vm665_vm2, %v2250_v22  ;;  %2200 = vmatmul.msk.bf16.gmra.mxu1 %vm665_vm2, %v2266_v23 }
  0xd9   : > { %v1529_v36 = vmax.f32 %v1401_v32, 0.0  ;;  %v1561_v37 = vmax.f32 %v1433_v33, 0.0  ;;  %2216 = vmatmul.msk.bf16.gmra.mxu2 %vm665_vm2, %v2282_v28  ;;  %2232 = vmatmul.msk.bf16.gmra.mxu3 %vm665_vm2, %v2298_v29 }
  0xda   : > { %v1466_v38 = vmax.f32 %v1338_v34, 0.0  ;;  %v1498_v39 = vmax.f32 %v1370_v35, 0.0 }
  0xdb   : > { %v1657_v42 = vpack.c.bf16 %v1529_v36, %v1529_v36  ;;  %v1689_v43 = vpack.c.bf16 %v1561_v37, %v1561_v37 }
  0xdc   : > { %v1594_v44 = vpack.c.bf16 %v1466_v38, %v1466_v38  ;;  %v1626_v45 = vpack.c.bf16 %v1498_v39, %v1498_v39  ;;  %v1054_v46 = vpop.f32.mrf.mxu2  ;;  %v1134_v47 = vpop.f32.mrf.mxu3 }
  0xdd   : > { %1786 = vst.msk [vmem:[%s2475_s8 + $0x11c] sm:$0xf] %vm1714_vm3, %v1657_v42  ;;  %v1270_v48 = vmul.f32 %v2451_v40, %v1054_v46  ;;  %v1302_v49 = vmul.f32 %v2451_v40, %v1134_v47  ;;  %v896_v50 = vpop.f32.mrf.mxu0  ;;  %v976_v51 = vpop.f32.mrf.mxu1 }
  0xde   : > { %1818 = vst.msk [vmem:[%s2475_s8 + $0x19c] sm:$0xf] %vm1714_vm3, %v1689_v43  ;;  %v1207_v52 = vmul.f32 %v2451_v40, %v896_v50  ;;  %v1239_v53 = vmul.f32 %v2451_v40, %v976_v51  ;;  %v2252_v50 = vld [vmem:[%s2382_s27 + $0x70] sm:$0xff] }
  0xdf   : > { %1723 = vst.msk [vmem:[%s2475_s8 + $0x20] sm:$0xf] %vm1714_vm3, %v1594_v44  ;;  %v1402_v54 = vadd.f32 %v2456_v41, %v1270_v48  ;;  %v1434_v55 = vadd.f32 %v2456_v41, %v1302_v49  ;;  %v2268_v51 = vld [vmem:[%s2382_s27 + $0xf0] sm:$0xff] }
  0xe0   : > { %1755 = vst.msk [vmem:[%s2475_s8 + $0xa0] sm:$0xf] %vm1714_vm3, %v1626_v45  ;;  %v1339_v56 = vadd.f32 %v2456_v41, %v1207_v52  ;;  %v1371_v57 = vadd.f32 %v2456_v41, %v1239_v53 }
  0xe1   : > { %v1530_v58 = vmax.f32 %v1402_v54, 0.0  ;;  %v1562_v59 = vmax.f32 %v1434_v55, 0.0 }
  0xe2   : > { %v1467_v60 = vmax.f32 %v1339_v56, 0.0  ;;  %v1499_v61 = vmax.f32 %v1371_v57, 0.0  ;;  %v2284_v56 = vld [vmem:[%s2382_s27 + $0x170] sm:$0xff] }
  0xe3   : > { %v1658_v62 = vpack.c.bf16 %v1530_v58, %v1530_v58  ;;  %v1690_v63 = vpack.c.bf16 %v1562_v59, %v1562_v59  ;;  %v2300_v57 = vld [vmem:[%s2382_s27 + $0x1f0] sm:$0xff] }
  0xe4   : > { %v1595_v0 = vpack.c.bf16 %v1467_v60, %v1467_v60  ;;  %v1627_v1 = vpack.c.bf16 %v1499_v61, %v1499_v61  ;;  %v1056_v2 = vpop.f32.mrf.mxu2  ;;  %v1136_v3 = vpop.f32.mrf.mxu3 }
  0xe5   : > { %1787 = vst.msk [vmem:[%s2475_s8 + $0x120] sm:$0xf] %vm1714_vm3, %v1658_v62  ;;  %v1271_v6 = vmul.f32 %v2451_v40, %v1056_v2  ;;  %v1303_v7 = vmul.f32 %v2451_v40, %v1136_v3  ;;  %v899_v8 = vpop.f32.mrf.mxu0  ;;  %v979_v9 = vpop.f32.mrf.mxu1 }
  0xe6   : > { %1819 = vst.msk [vmem:[%s2475_s8 + $0x1a0] sm:$0xf] %vm1714_vm3, %v1690_v63  ;;  %v1208_v12 = vmul.f32 %v2451_v40, %v899_v8  ;;  %v1240_v13 = vmul.f32 %v2451_v40, %v979_v9 }
  0xe7   : > { %1724 = vst.msk [vmem:[%s2475_s8 + $0x24] sm:$0xf] %vm1714_vm3, %v1595_v0  ;;  %v1403_v14 = vadd.f32 %v2456_v41, %v1271_v6  ;;  %v1435_v15 = vadd.f32 %v2456_v41, %v1303_v7 }
  0xe8   : > { %1756 = vst.msk [vmem:[%s2475_s8 + $0xa4] sm:$0xf] %vm1714_vm3, %v1627_v1  ;;  %v1340_v16 = vadd.f32 %v2456_v41, %v1208_v12  ;;  %v1372_v17 = vadd.f32 %v2456_v41, %v1240_v13  ;;  %2185 = vmatmul.msk.bf16.gmra.mxu0 %vm665_vm2, %v2251_v4  ;;  %2201 = vmatmul.msk.bf16.gmra.mxu1 %vm665_vm2, %v2267_v5 }
  0xe9   : > { %v1531_v18 = vmax.f32 %v1403_v14, 0.0  ;;  %v1563_v19 = vmax.f32 %v1435_v15, 0.0  ;;  %2217 = vmatmul.msk.bf16.gmra.mxu2 %vm665_vm2, %v2283_v10  ;;  %2233 = vmatmul.msk.bf16.gmra.mxu3 %vm665_vm2, %v2299_v11 }
  0xea   : > { %v1468_v20 = vmax.f32 %v1340_v16, 0.0  ;;  %v1500_v21 = vmax.f32 %v1372_v17, 0.0 }
  0xeb   : > { %v1659_v22 = vpack.c.bf16 %v1531_v18, %v1531_v18  ;;  %v1691_v23 = vpack.c.bf16 %v1563_v19, %v1563_v19 }
  0xec   : > { %v1596_v24 = vpack.c.bf16 %v1468_v20, %v1468_v20  ;;  %v1628_v25 = vpack.c.bf16 %v1500_v21, %v1500_v21  ;;  %v1059_v26 = vpop.f32.mrf.mxu2  ;;  %v1139_v27 = vpop.f32.mrf.mxu3 }
  0xed   : > { %1788 = vst.msk [vmem:[%s2475_s8 + $0x124] sm:$0xf] %vm1714_vm3, %v1659_v22  ;;  %v1272_v28 = vmul.f32 %v2451_v40, %v1059_v26  ;;  %v1304_v29 = vmul.f32 %v2451_v40, %v1139_v27  ;;  %v901_v30 = vpop.f32.mrf.mxu0  ;;  %v981_v31 = vpop.f32.mrf.mxu1 }
  0xee   : > { %1820 = vst.msk [vmem:[%s2475_s8 + $0x1a4] sm:$0xf] %vm1714_vm3, %v1691_v23  ;;  %v1209_v32 = vmul.f32 %v2451_v40, %v901_v30  ;;  %v1241_v33 = vmul.f32 %v2451_v40, %v981_v31  ;;  %v2253_v30 = vld [vmem:[%s2382_s27 + $0x78] sm:$0xff] }
  0xef   : > { %1725 = vst.msk [vmem:[%s2475_s8 + $0x28] sm:$0xf] %vm1714_vm3, %v1596_v24  ;;  %v1404_v34 = vadd.f32 %v2456_v41, %v1272_v28  ;;  %v1436_v35 = vadd.f32 %v2456_v41, %v1304_v29  ;;  %v2269_v31 = vld [vmem:[%s2382_s27 + $0xf8] sm:$0xff] }
  0xf0   : > { %1757 = vst.msk [vmem:[%s2475_s8 + $0xa8] sm:$0xf] %vm1714_vm3, %v1628_v25  ;;  %v1341_v36 = vadd.f32 %v2456_v41, %v1209_v32  ;;  %v1373_v37 = vadd.f32 %v2456_v41, %v1241_v33 }
  0xf1   : > { %v1532_v38 = vmax.f32 %v1404_v34, 0.0  ;;  %v1564_v39 = vmax.f32 %v1436_v35, 0.0 }
  0xf2   : > { %v1469_v42 = vmax.f32 %v1341_v36, 0.0  ;;  %v1501_v43 = vmax.f32 %v1373_v37, 0.0  ;;  %v2285_v36 = vld [vmem:[%s2382_s27 + $0x178] sm:$0xff] }
  0xf3   : > { %v1660_v44 = vpack.c.bf16 %v1532_v38, %v1532_v38  ;;  %v1692_v45 = vpack.c.bf16 %v1564_v39, %v1564_v39  ;;  %v2301_v37 = vld [vmem:[%s2382_s27 + $0x1f8] sm:$0xff] }
  0xf4   : > { %v1597_v46 = vpack.c.bf16 %v1469_v42, %v1469_v42  ;;  %v1629_v47 = vpack.c.bf16 %v1501_v43, %v1501_v43  ;;  %v1061_v48 = vpop.f32.mrf.mxu2  ;;  %v1141_v49 = vpop.f32.mrf.mxu3 }
  0xf5   : > { %1789 = vst.msk [vmem:[%s2475_s8 + $0x128] sm:$0xf] %vm1714_vm3, %v1660_v44  ;;  %v1273_v52 = vmul.f32 %v2451_v40, %v1061_v48  ;;  %v1305_v53 = vmul.f32 %v2451_v40, %v1141_v49  ;;  %v904_v54 = vpop.f32.mrf.mxu0  ;;  %v984_v55 = vpop.f32.mrf.mxu1 }
  0xf6   : > { %1821 = vst.msk [vmem:[%s2475_s8 + $0x1a8] sm:$0xf] %vm1714_vm3, %v1692_v45  ;;  %v1210_v58 = vmul.f32 %v2451_v40, %v904_v54  ;;  %v1242_v59 = vmul.f32 %v2451_v40, %v984_v55 }
  0xf7   : > { %1726 = vst.msk [vmem:[%s2475_s8 + $0x2c] sm:$0xf] %vm1714_vm3, %v1597_v46  ;;  %v1405_v60 = vadd.f32 %v2456_v41, %v1273_v52  ;;  %v1437_v61 = vadd.f32 %v2456_v41, %v1305_v53 }
  0xf8   : > { %1758 = vst.msk [vmem:[%s2475_s8 + $0xac] sm:$0xf] %vm1714_vm3, %v1629_v47  ;;  %v1342_v62 = vadd.f32 %v2456_v41, %v1210_v58  ;;  %v1374_v63 = vadd.f32 %v2456_v41, %v1242_v59  ;;  %2186 = vmatmul.msk.bf16.gmra.mxu0 %vm665_vm2, %v2252_v50  ;;  %2202 = vmatmul.msk.bf16.gmra.mxu1 %vm665_vm2, %v2268_v51 }
  0xf9   : > { %v1533_v0 = vmax.f32 %v1405_v60, 0.0  ;;  %v1565_v1 = vmax.f32 %v1437_v61, 0.0  ;;  %2218 = vmatmul.msk.bf16.gmra.mxu2 %vm665_vm2, %v2284_v56  ;;  %2234 = vmatmul.msk.bf16.gmra.mxu3 %vm665_vm2, %v2300_v57 }
  0xfa   : > { %v1470_v2 = vmax.f32 %v1342_v62, 0.0  ;;  %v1502_v3 = vmax.f32 %v1374_v63, 0.0 }
  0xfb   : > { %v1661_v4 = vpack.c.bf16 %v1533_v0, %v1533_v0  ;;  %v1693_v5 = vpack.c.bf16 %v1565_v1, %v1565_v1 }
  0xfc   : > { %v1598_v6 = vpack.c.bf16 %v1470_v2, %v1470_v2  ;;  %v1630_v7 = vpack.c.bf16 %v1502_v3, %v1502_v3  ;;  %v1064_v8 = vpop.f32.mrf.mxu2  ;;  %v1144_v9 = vpop.f32.mrf.mxu3 }
  0xfd   : > { %1790 = vst.msk [vmem:[%s2475_s8 + $0x12c] sm:$0xf] %vm1714_vm3, %v1661_v4  ;;  %v1274_v10 = vmul.f32 %v2451_v40, %v1064_v8  ;;  %v1306_v11 = vmul.f32 %v2451_v40, %v1144_v9  ;;  %v906_v12 = vpop.f32.mrf.mxu0  ;;  %v986_v13 = vpop.f32.mrf.mxu1 }
  0xfe   : > { %1822 = vst.msk [vmem:[%s2475_s8 + $0x1ac] sm:$0xf] %vm1714_vm3, %v1693_v5  ;;  %v1211_v14 = vmul.f32 %v2451_v40, %v906_v12  ;;  %v1243_v15 = vmul.f32 %v2451_v40, %v986_v13 }
  0xff   : > { %1727 = vst.msk [vmem:[%s2475_s8 + $0x30] sm:$0xf] %vm1714_vm3, %v1598_v6  ;;  %v1406_v16 = vadd.f32 %v2456_v41, %v1274_v10  ;;  %v1438_v17 = vadd.f32 %v2456_v41, %v1306_v11 }
 0x100   : > { %1759 = vst.msk [vmem:[%s2475_s8 + $0xb0] sm:$0xf] %vm1714_vm3, %v1630_v7  ;;  %v1343_v18 = vadd.f32 %v2456_v41, %v1211_v14  ;;  %v1375_v19 = vadd.f32 %v2456_v41, %v1243_v15 }
 0x101   : > { %v1534_v20 = vmax.f32 %v1406_v16, 0.0  ;;  %v1566_v21 = vmax.f32 %v1438_v17, 0.0 }
 0x102   : > { %v1471_v22 = vmax.f32 %v1343_v18, 0.0  ;;  %v1503_v23 = vmax.f32 %v1375_v19, 0.0 }
 0x103   : > { %v1662_v24 = vpack.c.bf16 %v1534_v20, %v1534_v20  ;;  %v1694_v25 = vpack.c.bf16 %v1566_v21, %v1566_v21 }
 0x104   : > { %v1599_v26 = vpack.c.bf16 %v1471_v22, %v1471_v22  ;;  %v1631_v27 = vpack.c.bf16 %v1503_v23, %v1503_v23  ;;  %v1066_v28 = vpop.f32.mrf.mxu2  ;;  %v1146_v29 = vpop.f32.mrf.mxu3 }
 0x105   : > { %1791 = vst.msk [vmem:[%s2475_s8 + $0x130] sm:$0xf] %vm1714_vm3, %v1662_v24  ;;  %v1275_v32 = vmul.f32 %v2451_v40, %v1066_v28  ;;  %v1307_v33 = vmul.f32 %v2451_v40, %v1146_v29  ;;  %v909_v34 = vpop.f32.mrf.mxu0  ;;  %v989_v35 = vpop.f32.mrf.mxu1 }
 0x106   : > { %1823 = vst.msk [vmem:[%s2475_s8 + $0x1b0] sm:$0xf] %vm1714_vm3, %v1694_v25  ;;  %v1212_v38 = vmul.f32 %v2451_v40, %v909_v34  ;;  %v1244_v39 = vmul.f32 %v2451_v40, %v989_v35 }
 0x107   : > { %1728 = vst.msk [vmem:[%s2475_s8 + $0x34] sm:$0xf] %vm1714_vm3, %v1599_v26  ;;  %v1407_v42 = vadd.f32 %v2456_v41, %v1275_v32  ;;  %v1439_v43 = vadd.f32 %v2456_v41, %v1307_v33 }
 0x108   : > { %1760 = vst.msk [vmem:[%s2475_s8 + $0xb4] sm:$0xf] %vm1714_vm3, %v1631_v27  ;;  %v1344_v44 = vadd.f32 %v2456_v41, %v1212_v38  ;;  %v1376_v45 = vadd.f32 %v2456_v41, %v1244_v39  ;;  %2187 = vmatmul.msk.bf16.gmra.mxu0 %vm665_vm2, %v2253_v30  ;;  %2203 = vmatmul.msk.bf16.gmra.mxu1 %vm665_vm2, %v2269_v31 }
 0x109   : > { %v1535_v46 = vmax.f32 %v1407_v42, 0.0  ;;  %v1567_v47 = vmax.f32 %v1439_v43, 0.0  ;;  %2219 = vmatmul.msk.bf16.gmra.mxu2 %vm665_vm2, %v2285_v36  ;;  %2235 = vmatmul.msk.bf16.gmra.mxu3 %vm665_vm2, %v2301_v37 }
 0x10a   : > { %v1472_v48 = vmax.f32 %v1344_v44, 0.0  ;;  %v1504_v49 = vmax.f32 %v1376_v45, 0.0 }
 0x10b   : > { %v1663_v50 = vpack.c.bf16 %v1535_v46, %v1535_v46  ;;  %v1695_v51 = vpack.c.bf16 %v1567_v47, %v1567_v47 }
 0x10c   : > { %v1600_v52 = vpack.c.bf16 %v1472_v48, %v1472_v48  ;;  %v1632_v53 = vpack.c.bf16 %v1504_v49, %v1504_v49  ;;  %v1069_v54 = vpop.f32.mrf.mxu2  ;;  %v1149_v55 = vpop.f32.mrf.mxu3 }
 0x10d   : > { %1792 = vst.msk [vmem:[%s2475_s8 + $0x134] sm:$0xf] %vm1714_vm3, %v1663_v50  ;;  %v1276_v56 = vmul.f32 %v2451_v40, %v1069_v54  ;;  %v1308_v57 = vmul.f32 %v2451_v40, %v1149_v55  ;;  %v911_v58 = vpop.f32.mrf.mxu0  ;;  %v991_v59 = vpop.f32.mrf.mxu1 }
 0x10e   : > { %1824 = vst.msk [vmem:[%s2475_s8 + $0x1b4] sm:$0xf] %vm1714_vm3, %v1695_v51  ;;  %v1213_v60 = vmul.f32 %v2451_v40, %v911_v58  ;;  %v1245_v61 = vmul.f32 %v2451_v40, %v991_v59 }
 0x10f   : > { %1729 = vst.msk [vmem:[%s2475_s8 + $0x38] sm:$0xf] %vm1714_vm3, %v1600_v52  ;;  %v1408_v62 = vadd.f32 %v2456_v41, %v1276_v56  ;;  %v1440_v63 = vadd.f32 %v2456_v41, %v1308_v57 }
 0x110   : > { %1761 = vst.msk [vmem:[%s2475_s8 + $0xb8] sm:$0xf] %vm1714_vm3, %v1632_v53  ;;  %v1345_v0 = vadd.f32 %v2456_v41, %v1213_v60  ;;  %v1377_v1 = vadd.f32 %v2456_v41, %v1245_v61 }
 0x111   : > { %v1536_v2 = vmax.f32 %v1408_v62, 0.0  ;;  %v1568_v3 = vmax.f32 %v1440_v63, 0.0 }
 0x112   : > { %v1473_v4 = vmax.f32 %v1345_v0, 0.0  ;;  %v1505_v5 = vmax.f32 %v1377_v1, 0.0 }
 0x113   : > { %v1664_v6 = vpack.c.bf16 %v1536_v2, %v1536_v2  ;;  %v1696_v7 = vpack.c.bf16 %v1568_v3, %v1568_v3 }
 0x114   : > { %v1601_v8 = vpack.c.bf16 %v1473_v4, %v1473_v4  ;;  %v1633_v9 = vpack.c.bf16 %v1505_v5, %v1505_v5  ;;  %v1071_v10 = vpop.f32.mrf.mxu2  ;;  %v1151_v11 = vpop.f32.mrf.mxu3 }
 0x115   : > { %1793 = vst.msk [vmem:[%s2475_s8 + $0x138] sm:$0xf] %vm1714_vm3, %v1664_v6  ;;  %v1277_v12 = vmul.f32 %v2451_v40, %v1071_v10  ;;  %v1309_v13 = vmul.f32 %v2451_v40, %v1151_v11  ;;  %v914_v14 = vpop.f32.mrf.mxu0  ;;  %v994_v15 = vpop.f32.mrf.mxu1 }
 0x116   : > { %1825 = vst.msk [vmem:[%s2475_s8 + $0x1b8] sm:$0xf] %vm1714_vm3, %v1696_v7  ;;  %v1214_v16 = vmul.f32 %v2451_v40, %v914_v14  ;;  %v1246_v17 = vmul.f32 %v2451_v40, %v994_v15 }
 0x117   : > { %1730 = vst.msk [vmem:[%s2475_s8 + $0x3c] sm:$0xf] %vm1714_vm3, %v1601_v8  ;;  %v1409_v18 = vadd.f32 %v2456_v41, %v1277_v12  ;;  %v1441_v19 = vadd.f32 %v2456_v41, %v1309_v13 }
 0x118   : > { %1762 = vst.msk [vmem:[%s2475_s8 + $0xbc] sm:$0xf] %vm1714_vm3, %v1633_v9  ;;  %v1346_v20 = vadd.f32 %v2456_v41, %v1214_v16  ;;  %v1378_v21 = vadd.f32 %v2456_v41, %v1246_v17 }
 0x119   : > { %v1537_v22 = vmax.f32 %v1409_v18, 0.0  ;;  %v1569_v23 = vmax.f32 %v1441_v19, 0.0 }
 0x11a   : > { %v1474_v24 = vmax.f32 %v1346_v20, 0.0  ;;  %v1506_v25 = vmax.f32 %v1378_v21, 0.0 }
 0x11b   : > { %v1665_v26 = vpack.c.bf16 %v1537_v22, %v1537_v22  ;;  %v1697_v27 = vpack.c.bf16 %v1569_v23, %v1569_v23 }
 0x11c   : > { %v1602_v28 = vpack.c.bf16 %v1474_v24, %v1474_v24  ;;  %v1634_v29 = vpack.c.bf16 %v1506_v25, %v1506_v25  ;;  %v1074_v30 = vpop.f32.mrf.mxu2  ;;  %v1154_v31 = vpop.f32.mrf.mxu3 }
 0x11d   : > { %1794 = vst.msk [vmem:[%s2475_s8 + $0x13c] sm:$0xf] %vm1714_vm3, %v1665_v26  ;;  %v1278_v32 = vmul.f32 %v2451_v40, %v1074_v30  ;;  %v1310_v33 = vmul.f32 %v2451_v40, %v1154_v31  ;;  %v916_v34 = vpop.f32.mrf.mxu0  ;;  %v996_v35 = vpop.f32.mrf.mxu1 }
 0x11e   : > { %1826 = vst.msk [vmem:[%s2475_s8 + $0x1bc] sm:$0xf] %vm1714_vm3, %v1697_v27  ;;  %v1215_v36 = vmul.f32 %v2451_v40, %v916_v34  ;;  %v1247_v37 = vmul.f32 %v2451_v40, %v996_v35 }
 0x11f   : > { %1731 = vst.msk [vmem:[%s2475_s8 + $0x40] sm:$0xf] %vm1714_vm3, %v1602_v28  ;;  %v1410_v38 = vadd.f32 %v2456_v41, %v1278_v32  ;;  %v1442_v39 = vadd.f32 %v2456_v41, %v1310_v33 }
 0x120   : > { %1763 = vst.msk [vmem:[%s2475_s8 + $0xc0] sm:$0xf] %vm1714_vm3, %v1634_v29  ;;  %v1347_v42 = vadd.f32 %v2456_v41, %v1215_v36  ;;  %v1379_v43 = vadd.f32 %v2456_v41, %v1247_v37 }
 0x121   : > { %v1538_v44 = vmax.f32 %v1410_v38, 0.0  ;;  %v1570_v45 = vmax.f32 %v1442_v39, 0.0 }
 0x122   : > { %v1475_v46 = vmax.f32 %v1347_v42, 0.0  ;;  %v1507_v47 = vmax.f32 %v1379_v43, 0.0 }
 0x123   : > { %v1666_v48 = vpack.c.bf16 %v1538_v44, %v1538_v44  ;;  %v1698_v49 = vpack.c.bf16 %v1570_v45, %v1570_v45 }
 0x124   : > { %v1603_v50 = vpack.c.bf16 %v1475_v46, %v1475_v46  ;;  %v1635_v51 = vpack.c.bf16 %v1507_v47, %v1507_v47  ;;  %v1076_v52 = vpop.f32.mrf.mxu2  ;;  %v1156_v53 = vpop.f32.mrf.mxu3 }
 0x125   : > { %1795 = vst.msk [vmem:[%s2475_s8 + $0x140] sm:$0xf] %vm1714_vm3, %v1666_v48  ;;  %v1279_v54 = vmul.f32 %v2451_v40, %v1076_v52  ;;  %v1311_v55 = vmul.f32 %v2451_v40, %v1156_v53  ;;  %v919_v56 = vpop.f32.mrf.mxu0  ;;  %v999_v57 = vpop.f32.mrf.mxu1 }
 0x126   : > { %1827 = vst.msk [vmem:[%s2475_s8 + $0x1c0] sm:$0xf] %vm1714_vm3, %v1698_v49  ;;  %v1216_v58 = vmul.f32 %v2451_v40, %v919_v56  ;;  %v1248_v59 = vmul.f32 %v2451_v40, %v999_v57 }
 0x127   : > { %1732 = vst.msk [vmem:[%s2475_s8 + $0x44] sm:$0xf] %vm1714_vm3, %v1603_v50  ;;  %v1411_v60 = vadd.f32 %v2456_v41, %v1279_v54  ;;  %v1443_v61 = vadd.f32 %v2456_v41, %v1311_v55 }
 0x128   : > { %1764 = vst.msk [vmem:[%s2475_s8 + $0xc4] sm:$0xf] %vm1714_vm3, %v1635_v51  ;;  %v1348_v62 = vadd.f32 %v2456_v41, %v1216_v58  ;;  %v1380_v63 = vadd.f32 %v2456_v41, %v1248_v59  ;;  %v2823_v41 = vld [vmem:[%s3056_s2] ss:$0 sm:$0xff] }
 0x129   : > { %v1539_v0 = vmax.f32 %v1411_v60, 0.0  ;;  %v1571_v1 = vmax.f32 %v1443_v61, 0.0 }
 0x12a   : > { %v1476_v2 = vmax.f32 %v1348_v62, 0.0  ;;  %v1508_v3 = vmax.f32 %v1380_v63, 0.0 }
 0x12b   : > { %v1667_v4 = vpack.c.bf16 %v1539_v0, %v1539_v0  ;;  %v1699_v5 = vpack.c.bf16 %v1571_v1, %v1571_v1 }
 0x12c   : > { %v1604_v6 = vpack.c.bf16 %v1476_v2, %v1476_v2  ;;  %v1636_v7 = vpack.c.bf16 %v1508_v3, %v1508_v3  ;;  %v1079_v8 = vpop.f32.mrf.mxu2  ;;  %v1159_v9 = vpop.f32.mrf.mxu3 }
 0x12d   : > { %1796 = vst.msk [vmem:[%s2475_s8 + $0x144] sm:$0xf] %vm1714_vm3, %v1667_v4  ;;  %v1280_v10 = vmul.f32 %v2451_v40, %v1079_v8  ;;  %v1312_v11 = vmul.f32 %v2823_v41, %v1159_v9  ;;  %v921_v12 = vpop.f32.mrf.mxu0  ;;  %v1001_v13 = vpop.f32.mrf.mxu1  ;;  %v2835_v40 = vld [vmem:[%s3057_s3] ss:$0 sm:$0xff] }
 0x12e   : > { %1828 = vst.msk [vmem:[%s2475_s8 + $0x1c4] sm:$0xf] %vm1714_vm3, %v1699_v5  ;;  %v1217_v14 = vmul.f32 %v2823_v41, %v921_v12  ;;  %v1249_v15 = vmul.f32 %v2823_v41, %v1001_v13 }
 0x12f   : > { %1733 = vst.msk [vmem:[%s2475_s8 + $0x48] sm:$0xf] %vm1714_vm3, %v1604_v6  ;;  %v1412_v16 = vadd.f32 %v2835_v40, %v1280_v10  ;;  %v1444_v17 = vadd.f32 %v2835_v40, %v1312_v11 }
 0x130   : > { %1765 = vst.msk [vmem:[%s2475_s8 + $0xc8] sm:$0xf] %vm1714_vm3, %v1636_v7  ;;  %v1349_v18 = vadd.f32 %v2835_v40, %v1217_v14  ;;  %v1381_v19 = vadd.f32 %v2835_v40, %v1249_v15 }
 0x131   : > { %v1540_v20 = vmax.f32 %v1412_v16, 0.0  ;;  %v1572_v21 = vmax.f32 %v1444_v17, 0.0 }
 0x132   : > { %v1477_v22 = vmax.f32 %v1349_v18, 0.0  ;;  %v1509_v23 = vmax.f32 %v1381_v19, 0.0 }
 0x133   : > { %v1668_v24 = vpack.c.bf16 %v1540_v20, %v1540_v20  ;;  %v1700_v25 = vpack.c.bf16 %v1572_v21, %v1572_v21 }
 0x134   : > { %v1605_v26 = vpack.c.bf16 %v1477_v22, %v1477_v22  ;;  %v1637_v27 = vpack.c.bf16 %v1509_v23, %v1509_v23  ;;  %v1081_v28 = vpop.f32.mrf.mxu2  ;;  %v1161_v29 = vpop.f32.mrf.mxu3 }
 0x135   : > { %1797 = vst.msk [vmem:[%s2475_s8 + $0x148] sm:$0xf] %vm1714_vm3, %v1668_v24  ;;  %v1281_v30 = vmul.f32 %v2823_v41, %v1081_v28  ;;  %v1313_v31 = vmul.f32 %v2823_v41, %v1161_v29  ;;  %v924_v32 = vpop.f32.mrf.mxu0  ;;  %v1004_v33 = vpop.f32.mrf.mxu1 }
 0x136   : > { %1829 = vst.msk [vmem:[%s2475_s8 + $0x1c8] sm:$0xf] %vm1714_vm3, %v1700_v25  ;;  %v1218_v34 = vmul.f32 %v2823_v41, %v924_v32  ;;  %v1250_v35 = vmul.f32 %v2823_v41, %v1004_v33 }
 0x137   : > { %1734 = vst.msk [vmem:[%s2475_s8 + $0x4c] sm:$0xf] %vm1714_vm3, %v1605_v26  ;;  %v1413_v36 = vadd.f32 %v2835_v40, %v1281_v30  ;;  %v1445_v37 = vadd.f32 %v2835_v40, %v1313_v31 }
 0x138   : > { %1766 = vst.msk [vmem:[%s2475_s8 + $0xcc] sm:$0xf] %vm1714_vm3, %v1637_v27  ;;  %v1350_v38 = vadd.f32 %v2835_v40, %v1218_v34  ;;  %v1382_v39 = vadd.f32 %v2835_v40, %v1250_v35 }
 0x139   : > { %v1541_v42 = vmax.f32 %v1413_v36, 0.0  ;;  %v1573_v43 = vmax.f32 %v1445_v37, 0.0 }
 0x13a   : > { %v1478_v44 = vmax.f32 %v1350_v38, 0.0  ;;  %v1510_v45 = vmax.f32 %v1382_v39, 0.0 }
 0x13b   : > { %v1669_v46 = vpack.c.bf16 %v1541_v42, %v1541_v42  ;;  %v1701_v47 = vpack.c.bf16 %v1573_v43, %v1573_v43 }
 0x13c   : > { %v1606_v48 = vpack.c.bf16 %v1478_v44, %v1478_v44  ;;  %v1638_v49 = vpack.c.bf16 %v1510_v45, %v1510_v45  ;;  %v1084_v50 = vpop.f32.mrf.mxu2  ;;  %v1164_v51 = vpop.f32.mrf.mxu3 }
 0x13d   : > { %1798 = vst.msk [vmem:[%s2475_s8 + $0x14c] sm:$0xf] %vm1714_vm3, %v1669_v46  ;;  %v1282_v52 = vmul.f32 %v2823_v41, %v1084_v50  ;;  %v1314_v53 = vmul.f32 %v2823_v41, %v1164_v51  ;;  %v926_v54 = vpop.f32.mrf.mxu0  ;;  %v1006_v55 = vpop.f32.mrf.mxu1 }
 0x13e   : > { %1830 = vst.msk [vmem:[%s2475_s8 + $0x1cc] sm:$0xf] %vm1714_vm3, %v1701_v47  ;;  %v1219_v56 = vmul.f32 %v2823_v41, %v926_v54  ;;  %v1251_v57 = vmul.f32 %v2823_v41, %v1006_v55 }
 0x13f   : > { %1735 = vst.msk [vmem:[%s2475_s8 + $0x50] sm:$0xf] %vm1714_vm3, %v1606_v48  ;;  %v1414_v58 = vadd.f32 %v2835_v40, %v1282_v52  ;;  %v1446_v59 = vadd.f32 %v2835_v40, %v1314_v53 }
 0x140   : > { %1767 = vst.msk [vmem:[%s2475_s8 + $0xd0] sm:$0xf] %vm1714_vm3, %v1638_v49  ;;  %v1351_v60 = vadd.f32 %v2835_v40, %v1219_v56  ;;  %v1383_v61 = vadd.f32 %v2835_v40, %v1251_v57 }
 0x141   : > { %v1542_v62 = vmax.f32 %v1414_v58, 0.0  ;;  %v1574_v63 = vmax.f32 %v1446_v59, 0.0 }
 0x142   : > { %v1479_v0 = vmax.f32 %v1351_v60, 0.0  ;;  %v1511_v1 = vmax.f32 %v1383_v61, 0.0 }
 0x143   : > { %v1670_v2 = vpack.c.bf16 %v1542_v62, %v1542_v62  ;;  %v1702_v3 = vpack.c.bf16 %v1574_v63, %v1574_v63 }
 0x144   : > { %v1607_v4 = vpack.c.bf16 %v1479_v0, %v1479_v0  ;;  %v1639_v5 = vpack.c.bf16 %v1511_v1, %v1511_v1  ;;  %v1086_v6 = vpop.f32.mrf.mxu2  ;;  %v1166_v7 = vpop.f32.mrf.mxu3 }
 0x145   : > { %1799 = vst.msk [vmem:[%s2475_s8 + $0x150] sm:$0xf] %vm1714_vm3, %v1670_v2  ;;  %v1283_v8 = vmul.f32 %v2823_v41, %v1086_v6  ;;  %v1315_v9 = vmul.f32 %v2823_v41, %v1166_v7  ;;  %v929_v10 = vpop.f32.mrf.mxu0  ;;  %v1009_v11 = vpop.f32.mrf.mxu1 }
 0x146   : > { %1831 = vst.msk [vmem:[%s2475_s8 + $0x1d0] sm:$0xf] %vm1714_vm3, %v1702_v3  ;;  %v1220_v12 = vmul.f32 %v2823_v41, %v929_v10  ;;  %v1252_v13 = vmul.f32 %v2823_v41, %v1009_v11 }
 0x147   : > { %1736 = vst.msk [vmem:[%s2475_s8 + $0x54] sm:$0xf] %vm1714_vm3, %v1607_v4  ;;  %v1415_v14 = vadd.f32 %v2835_v40, %v1283_v8  ;;  %v1447_v15 = vadd.f32 %v2835_v40, %v1315_v9 }
 0x148   : > { %1768 = vst.msk [vmem:[%s2475_s8 + $0xd4] sm:$0xf] %vm1714_vm3, %v1639_v5  ;;  %v1352_v16 = vadd.f32 %v2835_v40, %v1220_v12  ;;  %v1384_v17 = vadd.f32 %v2835_v40, %v1252_v13 }
 0x149   : > { %v1543_v18 = vmax.f32 %v1415_v14, 0.0  ;;  %v1575_v19 = vmax.f32 %v1447_v15, 0.0 }
 0x14a   : > { %v1480_v20 = vmax.f32 %v1352_v16, 0.0  ;;  %v1512_v21 = vmax.f32 %v1384_v17, 0.0 }
 0x14b   : > { %v1671_v22 = vpack.c.bf16 %v1543_v18, %v1543_v18  ;;  %v1703_v23 = vpack.c.bf16 %v1575_v19, %v1575_v19 }
 0x14c   : > { %v1608_v24 = vpack.c.bf16 %v1480_v20, %v1480_v20  ;;  %v1640_v25 = vpack.c.bf16 %v1512_v21, %v1512_v21  ;;  %v1089_v26 = vpop.f32.mrf.mxu2  ;;  %v1169_v27 = vpop.f32.mrf.mxu3 }
 0x14d   : > { %1800 = vst.msk [vmem:[%s2475_s8 + $0x154] sm:$0xf] %vm1714_vm3, %v1671_v22  ;;  %v1284_v28 = vmul.f32 %v2823_v41, %v1089_v26  ;;  %v1316_v29 = vmul.f32 %v2823_v41, %v1169_v27  ;;  %v931_v30 = vpop.f32.mrf.mxu0  ;;  %v1011_v31 = vpop.f32.mrf.mxu1 }
 0x14e   : > { %1832 = vst.msk [vmem:[%s2475_s8 + $0x1d4] sm:$0xf] %vm1714_vm3, %v1703_v23  ;;  %v1221_v32 = vmul.f32 %v2823_v41, %v931_v30  ;;  %v1253_v33 = vmul.f32 %v2823_v41, %v1011_v31 }
 0x14f   : > { %1737 = vst.msk [vmem:[%s2475_s8 + $0x58] sm:$0xf] %vm1714_vm3, %v1608_v24  ;;  %v1416_v34 = vadd.f32 %v2835_v40, %v1284_v28  ;;  %v1448_v35 = vadd.f32 %v2835_v40, %v1316_v29 }
 0x150   : > { %1769 = vst.msk [vmem:[%s2475_s8 + $0xd8] sm:$0xf] %vm1714_vm3, %v1640_v25  ;;  %v1353_v36 = vadd.f32 %v2835_v40, %v1221_v32  ;;  %v1385_v37 = vadd.f32 %v2835_v40, %v1253_v33 }
 0x151   : > { %v1544_v38 = vmax.f32 %v1416_v34, 0.0  ;;  %v1576_v39 = vmax.f32 %v1448_v35, 0.0 }
 0x152   : > { %v1481_v42 = vmax.f32 %v1353_v36, 0.0  ;;  %v1513_v43 = vmax.f32 %v1385_v37, 0.0 }
 0x153   : > { %v1672_v44 = vpack.c.bf16 %v1544_v38, %v1544_v38  ;;  %v1704_v45 = vpack.c.bf16 %v1576_v39, %v1576_v39 }
 0x154   : > { %v1609_v46 = vpack.c.bf16 %v1481_v42, %v1481_v42  ;;  %v1641_v47 = vpack.c.bf16 %v1513_v43, %v1513_v43  ;;  %v1091_v48 = vpop.f32.mrf.mxu2  ;;  %v1171_v49 = vpop.f32.mrf.mxu3 }
 0x155   : > { %1801 = vst.msk [vmem:[%s2475_s8 + $0x158] sm:$0xf] %vm1714_vm3, %v1672_v44  ;;  %v1285_v50 = vmul.f32 %v2823_v41, %v1091_v48  ;;  %v1317_v51 = vmul.f32 %v2823_v41, %v1171_v49  ;;  %v934_v52 = vpop.f32.mrf.mxu0  ;;  %v1014_v53 = vpop.f32.mrf.mxu1 }
 0x156   : > { %1833 = vst.msk [vmem:[%s2475_s8 + $0x1d8] sm:$0xf] %vm1714_vm3, %v1704_v45  ;;  %v1222_v54 = vmul.f32 %v2823_v41, %v934_v52  ;;  %v1254_v55 = vmul.f32 %v2823_v41, %v1014_v53 }
 0x157   : > { %1738 = vst.msk [vmem:[%s2475_s8 + $0x5c] sm:$0xf] %vm1714_vm3, %v1609_v46  ;;  %v1417_v56 = vadd.f32 %v2835_v40, %v1285_v50  ;;  %v1449_v57 = vadd.f32 %v2835_v40, %v1317_v51 }
 0x158   : > { %1770 = vst.msk [vmem:[%s2475_s8 + $0xdc] sm:$0xf] %vm1714_vm3, %v1641_v47  ;;  %v1354_v58 = vadd.f32 %v2835_v40, %v1222_v54  ;;  %v1386_v59 = vadd.f32 %v2835_v40, %v1254_v55 }
 0x159   : > { %v1545_v60 = vmax.f32 %v1417_v56, 0.0  ;;  %v1577_v61 = vmax.f32 %v1449_v57, 0.0 }
 0x15a   : > { %v1482_v62 = vmax.f32 %v1354_v58, 0.0  ;;  %v1514_v63 = vmax.f32 %v1386_v59, 0.0 }
 0x15b   : > { %v1673_v0 = vpack.c.bf16 %v1545_v60, %v1545_v60  ;;  %v1705_v1 = vpack.c.bf16 %v1577_v61, %v1577_v61 }
 0x15c   : > { %v1610_v2 = vpack.c.bf16 %v1482_v62, %v1482_v62  ;;  %v1642_v3 = vpack.c.bf16 %v1514_v63, %v1514_v63  ;;  %v1094_v4 = vpop.f32.mrf.mxu2  ;;  %v1174_v5 = vpop.f32.mrf.mxu3 }
 0x15d   : > { %1802 = vst.msk [vmem:[%s2475_s8 + $0x15c] sm:$0xf] %vm1714_vm3, %v1673_v0  ;;  %v1286_v6 = vmul.f32 %v2823_v41, %v1094_v4  ;;  %v1318_v7 = vmul.f32 %v2823_v41, %v1174_v5  ;;  %v936_v8 = vpop.f32.mrf.mxu0  ;;  %v1016_v9 = vpop.f32.mrf.mxu1 }
 0x15e   : > { %1834 = vst.msk [vmem:[%s2475_s8 + $0x1dc] sm:$0xf] %vm1714_vm3, %v1705_v1  ;;  %v1223_v10 = vmul.f32 %v2823_v41, %v936_v8  ;;  %v1255_v11 = vmul.f32 %v2823_v41, %v1016_v9 }
 0x15f   : > { %1739 = vst.msk [vmem:[%s2475_s8 + $0x60] sm:$0xf] %vm1714_vm3, %v1610_v2  ;;  %v1418_v12 = vadd.f32 %v2835_v40, %v1286_v6  ;;  %v1450_v13 = vadd.f32 %v2835_v40, %v1318_v7 }
 0x160   : > { %1771 = vst.msk [vmem:[%s2475_s8 + $0xe0] sm:$0xf] %vm1714_vm3, %v1642_v3  ;;  %v1355_v14 = vadd.f32 %v2835_v40, %v1223_v10  ;;  %v1387_v15 = vadd.f32 %v2835_v40, %v1255_v11 }
 0x161   : > { %v1546_v16 = vmax.f32 %v1418_v12, 0.0  ;;  %v1578_v17 = vmax.f32 %v1450_v13, 0.0 }
 0x162   : > { %v1483_v18 = vmax.f32 %v1355_v14, 0.0  ;;  %v1515_v19 = vmax.f32 %v1387_v15, 0.0 }
 0x163   : > { %v1674_v20 = vpack.c.bf16 %v1546_v16, %v1546_v16  ;;  %v1706_v21 = vpack.c.bf16 %v1578_v17, %v1578_v17 }
 0x164   : > { %v1611_v22 = vpack.c.bf16 %v1483_v18, %v1483_v18  ;;  %v1643_v23 = vpack.c.bf16 %v1515_v19, %v1515_v19  ;;  %v1096_v24 = vpop.f32.mrf.mxu2  ;;  %v1176_v25 = vpop.f32.mrf.mxu3 }
 0x165   : > { %1803 = vst.msk [vmem:[%s2475_s8 + $0x160] sm:$0xf] %vm1714_vm3, %v1674_v20  ;;  %v1287_v26 = vmul.f32 %v2823_v41, %v1096_v24  ;;  %v1319_v27 = vmul.f32 %v2823_v41, %v1176_v25  ;;  %v939_v28 = vpop.f32.mrf.mxu0  ;;  %v1019_v29 = vpop.f32.mrf.mxu1 }
 0x166   : > { %1835 = vst.msk [vmem:[%s2475_s8 + $0x1e0] sm:$0xf] %vm1714_vm3, %v1706_v21  ;;  %v1224_v30 = vmul.f32 %v2823_v41, %v939_v28  ;;  %v1256_v31 = vmul.f32 %v2823_v41, %v1019_v29 }
 0x167   : > { %1740 = vst.msk [vmem:[%s2475_s8 + $0x64] sm:$0xf] %vm1714_vm3, %v1611_v22  ;;  %v1419_v32 = vadd.f32 %v2835_v40, %v1287_v26  ;;  %v1451_v33 = vadd.f32 %v2835_v40, %v1319_v27 }
 0x168   : > { %1772 = vst.msk [vmem:[%s2475_s8 + $0xe4] sm:$0xf] %vm1714_vm3, %v1643_v23  ;;  %v1356_v34 = vadd.f32 %v2835_v40, %v1224_v30  ;;  %v1388_v35 = vadd.f32 %v2835_v40, %v1256_v31 }
 0x169   : > { %v1547_v36 = vmax.f32 %v1419_v32, 0.0  ;;  %v1579_v37 = vmax.f32 %v1451_v33, 0.0 }
 0x16a   : > { %v1484_v38 = vmax.f32 %v1356_v34, 0.0  ;;  %v1516_v39 = vmax.f32 %v1388_v35, 0.0 }
 0x16b   : > { %v1675_v42 = vpack.c.bf16 %v1547_v36, %v1547_v36  ;;  %v1707_v43 = vpack.c.bf16 %v1579_v37, %v1579_v37 }
 0x16c   : > { %v1612_v44 = vpack.c.bf16 %v1484_v38, %v1484_v38  ;;  %v1644_v45 = vpack.c.bf16 %v1516_v39, %v1516_v39  ;;  %v1099_v46 = vpop.f32.mrf.mxu2  ;;  %v1179_v47 = vpop.f32.mrf.mxu3 }
 0x16d   : > { %1804 = vst.msk [vmem:[%s2475_s8 + $0x164] sm:$0xf] %vm1714_vm3, %v1675_v42  ;;  %v1288_v48 = vmul.f32 %v2823_v41, %v1099_v46  ;;  %v1320_v49 = vmul.f32 %v2823_v41, %v1179_v47  ;;  %v941_v50 = vpop.f32.mrf.mxu0  ;;  %v1021_v51 = vpop.f32.mrf.mxu1 }
 0x16e   : > { %1836 = vst.msk [vmem:[%s2475_s8 + $0x1e4] sm:$0xf] %vm1714_vm3, %v1707_v43  ;;  %v1225_v52 = vmul.f32 %v2823_v41, %v941_v50  ;;  %v1257_v53 = vmul.f32 %v2823_v41, %v1021_v51 }
 0x16f   : > { %1741 = vst.msk [vmem:[%s2475_s8 + $0x68] sm:$0xf] %vm1714_vm3, %v1612_v44  ;;  %v1420_v54 = vadd.f32 %v2835_v40, %v1288_v48  ;;  %v1452_v55 = vadd.f32 %v2835_v40, %v1320_v49 }
 0x170   : > { %1773 = vst.msk [vmem:[%s2475_s8 + $0xe8] sm:$0xf] %vm1714_vm3, %v1644_v45  ;;  %v1357_v56 = vadd.f32 %v2835_v40, %v1225_v52  ;;  %v1389_v57 = vadd.f32 %v2835_v40, %v1257_v53 }
 0x171   : > { %v1548_v58 = vmax.f32 %v1420_v54, 0.0  ;;  %v1580_v59 = vmax.f32 %v1452_v55, 0.0 }
 0x172   : > { %v1485_v60 = vmax.f32 %v1357_v56, 0.0  ;;  %v1517_v61 = vmax.f32 %v1389_v57, 0.0 }
 0x173   : > { %v1676_v62 = vpack.c.bf16 %v1548_v58, %v1548_v58  ;;  %v1708_v63 = vpack.c.bf16 %v1580_v59, %v1580_v59 }
 0x174   : > { %v1613_v0 = vpack.c.bf16 %v1485_v60, %v1485_v60  ;;  %v1645_v1 = vpack.c.bf16 %v1517_v61, %v1517_v61  ;;  %v1101_v2 = vpop.f32.mrf.mxu2  ;;  %v1181_v3 = vpop.f32.mrf.mxu3 }
 0x175   : > { %1805 = vst.msk [vmem:[%s2475_s8 + $0x168] sm:$0xf] %vm1714_vm3, %v1676_v62  ;;  %v1289_v4 = vmul.f32 %v2823_v41, %v1101_v2  ;;  %v1321_v5 = vmul.f32 %v2823_v41, %v1181_v3  ;;  %v944_v6 = vpop.f32.mrf.mxu0  ;;  %v1024_v7 = vpop.f32.mrf.mxu1 }
 0x176   : > { %1837 = vst.msk [vmem:[%s2475_s8 + $0x1e8] sm:$0xf] %vm1714_vm3, %v1708_v63  ;;  %v1226_v8 = vmul.f32 %v2823_v41, %v944_v6  ;;  %v1258_v9 = vmul.f32 %v2823_v41, %v1024_v7 }
 0x177   : > { %1742 = vst.msk [vmem:[%s2475_s8 + $0x6c] sm:$0xf] %vm1714_vm3, %v1613_v0  ;;  %v1421_v10 = vadd.f32 %v2835_v40, %v1289_v4  ;;  %v1453_v11 = vadd.f32 %v2835_v40, %v1321_v5 }
 0x178   : > { %1774 = vst.msk [vmem:[%s2475_s8 + $0xec] sm:$0xf] %vm1714_vm3, %v1645_v1  ;;  %v1358_v12 = vadd.f32 %v2835_v40, %v1226_v8  ;;  %v1390_v13 = vadd.f32 %v2835_v40, %v1258_v9 }
 0x179   : > { %v1549_v14 = vmax.f32 %v1421_v10, 0.0  ;;  %v1581_v15 = vmax.f32 %v1453_v11, 0.0 }
 0x17a   : > { %v1486_v16 = vmax.f32 %v1358_v12, 0.0  ;;  %v1518_v17 = vmax.f32 %v1390_v13, 0.0 }
 0x17b   : > { %v1677_v18 = vpack.c.bf16 %v1549_v14, %v1549_v14  ;;  %v1709_v19 = vpack.c.bf16 %v1581_v15, %v1581_v15 }
 0x17c   : > { %v1614_v20 = vpack.c.bf16 %v1486_v16, %v1486_v16  ;;  %v1646_v21 = vpack.c.bf16 %v1518_v17, %v1518_v17  ;;  %v1104_v22 = vpop.f32.mrf.mxu2  ;;  %v1184_v23 = vpop.f32.mrf.mxu3 }
 0x17d   : > { %1806 = vst.msk [vmem:[%s2475_s8 + $0x16c] sm:$0xf] %vm1714_vm3, %v1677_v18  ;;  %v1290_v24 = vmul.f32 %v2823_v41, %v1104_v22  ;;  %v1322_v25 = vmul.f32 %v2823_v41, %v1184_v23  ;;  %v946_v26 = vpop.f32.mrf.mxu0  ;;  %v1026_v27 = vpop.f32.mrf.mxu1 }
 0x17e   : > { %1838 = vst.msk [vmem:[%s2475_s8 + $0x1ec] sm:$0xf] %vm1714_vm3, %v1709_v19  ;;  %v1227_v28 = vmul.f32 %v2823_v41, %v946_v26  ;;  %v1259_v29 = vmul.f32 %v2823_v41, %v1026_v27 }
 0x17f   : > { %1743 = vst.msk [vmem:[%s2475_s8 + $0x70] sm:$0xf] %vm1714_vm3, %v1614_v20  ;;  %v1422_v30 = vadd.f32 %v2835_v40, %v1290_v24  ;;  %v1454_v31 = vadd.f32 %v2835_v40, %v1322_v25 }
 0x180   : > { %1775 = vst.msk [vmem:[%s2475_s8 + $0xf0] sm:$0xf] %vm1714_vm3, %v1646_v21  ;;  %v1359_v32 = vadd.f32 %v2835_v40, %v1227_v28  ;;  %v1391_v33 = vadd.f32 %v2835_v40, %v1259_v29 }
 0x181   : > { %v1550_v34 = vmax.f32 %v1422_v30, 0.0  ;;  %v1582_v35 = vmax.f32 %v1454_v31, 0.0 }
 0x182   : > { %v1487_v36 = vmax.f32 %v1359_v32, 0.0  ;;  %v1519_v37 = vmax.f32 %v1391_v33, 0.0 }
 0x183   : > { %v1678_v38 = vpack.c.bf16 %v1550_v34, %v1550_v34  ;;  %v1710_v39 = vpack.c.bf16 %v1582_v35, %v1582_v35 }
 0x184   : > { %v1615_v42 = vpack.c.bf16 %v1487_v36, %v1487_v36  ;;  %v1647_v43 = vpack.c.bf16 %v1519_v37, %v1519_v37  ;;  %v1106_v44 = vpop.f32.mrf.mxu2  ;;  %v1186_v45 = vpop.f32.mrf.mxu3 }
 0x185   : > { %1807 = vst.msk [vmem:[%s2475_s8 + $0x170] sm:$0xf] %vm1714_vm3, %v1678_v38  ;;  %v1291_v46 = vmul.f32 %v2823_v41, %v1106_v44  ;;  %v1323_v47 = vmul.f32 %v2823_v41, %v1186_v45  ;;  %v949_v48 = vpop.f32.mrf.mxu0  ;;  %v1029_v49 = vpop.f32.mrf.mxu1 }
 0x186   : > { %1839 = vst.msk [vmem:[%s2475_s8 + $0x1f0] sm:$0xf] %vm1714_vm3, %v1710_v39  ;;  %v1228_v50 = vmul.f32 %v2823_v41, %v949_v48  ;;  %v1260_v51 = vmul.f32 %v2823_v41, %v1029_v49 }
 0x187   : > { %1744 = vst.msk [vmem:[%s2475_s8 + $0x74] sm:$0xf] %vm1714_vm3, %v1615_v42  ;;  %v1423_v52 = vadd.f32 %v2835_v40, %v1291_v46  ;;  %v1455_v53 = vadd.f32 %v2835_v40, %v1323_v47 }
 0x188   : > { %1776 = vst.msk [vmem:[%s2475_s8 + $0xf4] sm:$0xf] %vm1714_vm3, %v1647_v43  ;;  %v1360_v54 = vadd.f32 %v2835_v40, %v1228_v50  ;;  %v1392_v55 = vadd.f32 %v2835_v40, %v1260_v51 }
 0x189   : > { %v1551_v56 = vmax.f32 %v1423_v52, 0.0  ;;  %v1583_v57 = vmax.f32 %v1455_v53, 0.0 }
 0x18a   : > { %v1488_v58 = vmax.f32 %v1360_v54, 0.0  ;;  %v1520_v59 = vmax.f32 %v1392_v55, 0.0 }
 0x18b   : > { %v1679_v60 = vpack.c.bf16 %v1551_v56, %v1551_v56  ;;  %v1711_v61 = vpack.c.bf16 %v1583_v57, %v1583_v57 }
 0x18c   : > { %v1616_v62 = vpack.c.bf16 %v1488_v58, %v1488_v58  ;;  %v1648_v63 = vpack.c.bf16 %v1520_v59, %v1520_v59  ;;  %v1109_v0 = vpop.f32.mrf.mxu2  ;;  %v1189_v1 = vpop.f32.mrf.mxu3 }
 0x18d   : > { %1808 = vst.msk [vmem:[%s2475_s8 + $0x174] sm:$0xf] %vm1714_vm3, %v1679_v60  ;;  %v1292_v2 = vmul.f32 %v2823_v41, %v1109_v0  ;;  %v1324_v3 = vmul.f32 %v2823_v41, %v1189_v1  ;;  %v951_v4 = vpop.f32.mrf.mxu0  ;;  %v1031_v5 = vpop.f32.mrf.mxu1 }
 0x18e   : > { %1840 = vst.msk [vmem:[%s2475_s8 + $0x1f4] sm:$0xf] %vm1714_vm3, %v1711_v61  ;;  %v1229_v6 = vmul.f32 %v2823_v41, %v951_v4  ;;  %v1261_v7 = vmul.f32 %v2823_v41, %v1031_v5 }
 0x18f   : > { %1745 = vst.msk [vmem:[%s2475_s8 + $0x78] sm:$0xf] %vm1714_vm3, %v1616_v62  ;;  %v1424_v8 = vadd.f32 %v2835_v40, %v1292_v2  ;;  %v1456_v9 = vadd.f32 %v2835_v40, %v1324_v3 }
 0x190   : > { %1777 = vst.msk [vmem:[%s2475_s8 + $0xf8] sm:$0xf] %vm1714_vm3, %v1648_v63  ;;  %v1361_v10 = vadd.f32 %v2835_v40, %v1229_v6  ;;  %v1393_v11 = vadd.f32 %v2835_v40, %v1261_v7 }
 0x191   : > { %v1552_v12 = vmax.f32 %v1424_v8, 0.0  ;;  %v1584_v13 = vmax.f32 %v1456_v9, 0.0 }
 0x192   : > { %v1489_v14 = vmax.f32 %v1361_v10, 0.0  ;;  %v1521_v15 = vmax.f32 %v1393_v11, 0.0 }
 0x193   : > { %v1680_v16 = vpack.c.bf16 %v1552_v12, %v1552_v12  ;;  %v1712_v17 = vpack.c.bf16 %v1584_v13, %v1584_v13 }
 0x194   : > { %v1617_v18 = vpack.c.bf16 %v1489_v14, %v1489_v14  ;;  %v1649_v19 = vpack.c.bf16 %v1521_v15, %v1521_v15  ;;  %v1111_v20 = vpop.f32.mrf.mxu2  ;;  %v1191_v21 = vpop.f32.mrf.mxu3 }
 0x195   : > { %1809 = vst.msk [vmem:[%s2475_s8 + $0x178] sm:$0xf] %vm1714_vm3, %v1680_v16  ;;  %v1293_v22 = vmul.f32 %v2823_v41, %v1111_v20  ;;  %v1325_v23 = vmul.f32 %v2823_v41, %v1191_v21 }
 0x196   : > { %1841 = vst.msk [vmem:[%s2475_s8 + $0x1f8] sm:$0xf] %vm1714_vm3, %v1712_v17 }
 0x197   : > { %1746 = vst.msk [vmem:[%s2475_s8 + $0x7c] sm:$0xf] %vm1714_vm3, %v1617_v18  ;;  %v1425_v24 = vadd.f32 %v2835_v40, %v1293_v22  ;;  %v1457_v25 = vadd.f32 %v2835_v40, %v1325_v23 }
 0x198   : > { %1778 = vst.msk [vmem:[%s2475_s8 + $0xfc] sm:$0xf] %vm1714_vm3, %v1649_v19 }
 0x199   : > { %v1553_v26 = vmax.f32 %v1425_v24, 0.0  ;;  %v1585_v27 = vmax.f32 %v1457_v25, 0.0 }
 0x19b   : > { %v1681_v28 = vpack.c.bf16 %v1553_v26, %v1553_v26  ;;  %v1713_v29 = vpack.c.bf16 %v1585_v27, %v1585_v27 }
 0x19d   : > { %1810 = vst.msk [vmem:[%s2475_s8 + $0x17c] sm:$0xf] %vm1714_vm3, %v1681_v28 }
 0x19e   : > { %1842 = vst.msk [vmem:[%s2475_s8 + $0x1fc] sm:$0xf] %vm1714_vm3, %v1713_v29 }
 0x19f PF: > { %s14_s15 = sadd.s32 1, %s2329_s15  }
 0x1a0   : > { %p11_p4 = scmp.ge.s32.totalorder %s14_s15, 34  }
 0x1a2   :  { %13 = sbr.rel (!%p11_p4) target bundleno = 1 (0x1), region = 66 }

</bundles_post_ra>
